<compile_context>
chip_gen: v6e
topology: v6e:2x2x1
jax: 0.10.0
libtpu: 0.0.40
codegen_flags: <defaults>
</compile_context>

<pallas_src>
import jax
import jax.numpy as jnp
from jax import lax
from jax.experimental import pallas as pl
from jax.experimental.pallas import tpu as pltpu


# ----------------------------- fused Pallas kernel ------------------------------

def make_fused_lstm_kernel(L, T, B, H, Din):
    H4 = 4 * H
    f32 = jnp.float32
    bf16 = jnp.bfloat16

    def sigmoid_fast(x):
        # exp on EUP + approximate reciprocal on EUP -> no refined divide on the VPU.
        return pl.reciprocal(1.0 + jnp.exp(-x), approx=True)

    def kernel(*refs):
        # ---- unpack (inputs..., output) ----
        x_ref = refs[0]                       # (B, T, Din)   f32, batch-first
        wih0_ref = refs[1]                    # (Din, 4H)     f32   layer-0 input weights
        idx = 2
        if L > 1:
            wih_ref = refs[idx]; idx += 1     # (L-1, H, 4H)  bf16  layer>=1 input weights
        whh_ref = refs[idx]                   # (L, H, 4H)    bf16  recurrent weights
        b_ref = refs[idx + 1]                 # (L, 1, 4H)    f32   b_ih + b_hh
        wfc_ref = refs[idx + 2]               # (H, O)        f32
        bfc_ref = refs[idx + 3]               # (1, O)        f32
        out_ref = refs[idx + 4]               # (B, O)        f32

        # ---- hoisted layer-0 input projection: one MXU matmul for the whole
        #      sequence, bias added once; completely off the recurrent chain. ----
        x2d = x_ref[...].reshape(B * T, Din)                       # layout-trivial collapse
        xp0 = (jnp.dot(x2d, wih0_ref[...], preferred_element_type=f32)
               + b_ref[0]).reshape(B, T, H4)                       # (B, T, 4H) batch-major

        # Per-layer weights as values (tiny; live in vregs across the unrolled loop).
        whh = [whh_ref[l] for l in range(L)]                       # (H, 4H) bf16
        wih = [None] + ([wih_ref[l] for l in range(L - 1)] if L > 1 else [])

        # Recurrent state as plain values -> no VMEM round trips between layers/steps.
        h = [jnp.zeros((B, H), f32) for _ in range(L)]
        c = [jnp.zeros((B, H), f32) for _ in range(L)]

        def cell(xproj, h_prev, c_prev, whh_l):
            # Recurrent matmul: bf16 operands, f32 accumulate (single MXU pass).
            gates = xproj + jnp.dot(h_prev.astype(bf16), whh_l,
                                    preferred_element_type=f32)    # (B, 4H)
            # Full-width (one vreg of lanes) activations, then static lane slices in
            # PyTorch gate order [i, f, g, o].  Cross-gate lane moves go to the XLU.
            sg = sigmoid_fast(gates)
            tg = jnp.tanh(gates)
            i_g = sg[:, 0:H]
            f_g = sg[:, H:2 * H]
            g_g = tg[:, 2 * H:3 * H]
            o_g = sg[:, 3 * H:4 * H]
            c_new = f_g * c_prev + i_g * g_g
            h_new = o_g * jnp.tanh(c_new)
            return h_new, c_new

        # ---- wavefront over (layer, time): macro step m runs layer l's cell for
        #      time t = m - l.  Layers are visited deepest-first so h[l-1] still holds
        #      the PREVIOUS macro step's value (= h_{l-1} at time t), which also makes
        #      all cells within a macro step mutually independent. ----
        for m in range(T + L - 1):
            for l in range(L - 1, -1, -1):
                t = m - l
                if 0 <= t < T:
                    if l == 0:
                        xproj = xp0[:, t, :]                       # static sublane slice
                    else:
                        # Layer-l input projection: depends only on layer l-1's output
                        # from the previous macro step (off layer-l's own recurrence).
                        xproj = jnp.dot(h[l - 1].astype(bf16), wih[l],
                                        preferred_element_type=f32) + b_ref[l]
                    h[l], c[l] = cell(xproj, h[l], c[l], whh[l])

        # ---- FC head + sigmoid on h_{L-1}[T-1]  (== out[:, -1, :] of the LSTM) ----
        out_ref[...] = jax.nn.sigmoid(
            jnp.dot(h[L - 1], wfc_ref[...], preferred_element_type=f32)
            + bfc_ref[...])

    return kernel


# ------------------------------ JAX wrapper --------------------------------

@jax.jit
def lstm_forward(x, kparams):
    """x: (B, T, input_dim) batch-first. Returns (B, out_dim). Zero wrapper data ops."""
    B, T, Din = x.shape
    L, H, _ = kparams["whh"].shape
    O = kparams["fc_w"].shape[1]

    inputs = [x, kparams["wih0"]]
    if L > 1:
        inputs.append(kparams["wih_rest"])
    inputs += [kparams["whh"], kparams["bias"], kparams["fc_w"], kparams["fc_b"]]

    vmem = lambda: pl.BlockSpec(memory_space=pltpu.MemorySpace.VMEM)
    return pl.pallas_call(
        make_fused_lstm_kernel(L, T, B, H, Din),
        out_shape=jax.ShapeDtypeStruct((B, O), jnp.float32),
        in_specs=[vmem() for _ in inputs],
        out_specs=vmem(),
    )(*inputs)


# -------------------------- pure-JAX f32 reference (for checking) ----------------

def lstm_forward_ref(x, rparams):
    B, T, Din = x.shape
    seq = jnp.transpose(x, (1, 0, 2)).astype(jnp.float32)   # (T, B, Din)
    for (w_ih_t, w_hh_t, b) in rparams["lstm"]:
        H = w_hh_t.shape[0]

        def step(carry, x_t):
            h, c = carry
            gates = x_t @ w_ih_t + h @ w_hh_t + b
            i = jax.nn.sigmoid(gates[:, 0:H])
            f = jax.nn.sigmoid(gates[:, H:2 * H])
            g = jnp.tanh(gates[:, 2 * H:3 * H])
            o = jax.nn.sigmoid(gates[:, 3 * H:4 * H])
            c = f * c + i * g
            h = o * jnp.tanh(c)
            return (h, c), h

        init = (jnp.zeros((B, H), jnp.float32), jnp.zeros((B, H), jnp.float32))
        (_, _), seq = lax.scan(step, init, seq)
    return jax.nn.sigmoid(seq[-1] @ rparams["fc_w_t"] + rparams["fc_b"])


# --------------------------- deterministic init ------------------------------

def xavier_uniform(key, shape):
    fan_out, fan_in = shape
    bound = jnp.sqrt(6.0 / (fan_in + fan_out))
    return jax.random.uniform(key, shape, jnp.float32, -bound, bound)


def orthogonal(key, shape):
    rows, cols = shape
    a = jax.random.normal(key, (max(rows, cols), min(rows, cols)), jnp.float32)
    q, r = jnp.linalg.qr(a)
    q = q * jnp.sign(jnp.diag(r))[None, :]
    if rows < cols:
        q = q.T
    return q[:rows, :cols]


def init_params(key, input_dim, hidden_dim, num_layers, out_dim):
    """Returns (kernel_params packed/bf16, ref_params f32).  Bias = b_ih + b_hh (zeros)."""
    H, H4 = hidden_dim, 4 * hidden_dim
    layers = []
    for layer in range(num_layers):
        d_in = input_dim if layer == 0 else hidden_dim
        key, k1, k2 = jax.random.split(key, 3)
        w_ih = xavier_uniform(k1, (H4, d_in))           # PyTorch layout (4H, D_in)
        w_hh = orthogonal(k2, (H4, hidden_dim))         # PyTorch layout (4H, H)
        bias = jnp.zeros((1, H4), jnp.float32)          # b_ih + b_hh = 0
        layers.append((w_ih.T, w_hh.T, bias))           # pre-transposed (D_in,4H),(H,4H)
    key, kfc = jax.random.split(key)
    fc_w_t = xavier_uniform(kfc, (out_dim, hidden_dim)).T   # (H, O)
    fc_b = jnp.zeros((1, out_dim), jnp.float32)

    kernel_params = {
        "wih0": layers[0][0],                                               # (Din,4H) f32
        "whh": jnp.stack([w for (_, w, _) in layers]).astype(jnp.bfloat16),  # (L,H,4H)
        "bias": jnp.stack([b for (_, _, b) in layers]),                     # (L,1,4H) f32
        "fc_w": fc_w_t,
        "fc_b": fc_b,
    }
    if num_layers > 1:
        kernel_params["wih_rest"] = jnp.stack(
            [w for (w, _, _) in layers[1:]]).astype(jnp.bfloat16)           # (L-1,H,4H)

    ref_params = {"lstm": layers, "fc_w_t": fc_w_t, "fc_b": fc_b}
    return kernel_params, ref_params


# ----------------------------------- main ------------------------------------

if __name__ == "__main__":
    B, T = 2, 8
    input_dim, hidden_dim, num_layers, out_dim = 4, 32, 2, 8

    key = jax.random.PRNGKey(0)
    kx, kp = jax.random.split(key)
    x = jax.random.normal(kx, (B, T, input_dim), jnp.float32)
    kparams, rparams = init_params(kp, input_dim, hidden_dim, num_layers, out_dim)

    out = lstm_forward(x, kparams)
    out = jax.block_until_ready(out)

    assert out.shape == (B, out_dim)
    assert bool(jnp.all(jnp.isfinite(out)))

    # Reference is full f32; kernel uses bf16 recurrent-matmul operands (f32 accumulate)
    # + approx-reciprocal sigmoid, so allow ~1e-2 abs on sigmoid outputs (typical ~1e-3).
    ref = lstm_forward_ref(x, rparams)
    assert bool(jnp.max(jnp.abs(out - ref)) < 1e-2)

    print("KERNEL_OK")
</pallas_src>

<mosaic_0001>
module attributes {stable_mosaic.version = 11 : i64} {
  func.func @kernel(%arg0: memref<2x8x4xf32, #tpu.memory_space<vmem>>, %arg1: memref<4x128xf32, #tpu.memory_space<vmem>>, %arg2: memref<1x32x128xbf16, #tpu.memory_space<vmem>>, %arg3: memref<2x32x128xbf16, #tpu.memory_space<vmem>>, %arg4: memref<2x1x128xf32, #tpu.memory_space<vmem>>, %arg5: memref<32x8xf32, #tpu.memory_space<vmem>>, %arg6: memref<1x8xf32, #tpu.memory_space<vmem>>, %arg7: memref<2x8xf32, #tpu.memory_space<vmem>>) attributes {dimension_semantics = [], scalar_prefetch = 0 : i64, scratch_operands = 0 : i64, tpu.core_type = #tpu.core_type<tc>} {
    %c0 = arith.constant 0 : index
    %c0_0 = arith.constant 0 : index
    %c0_1 = arith.constant 0 : index
    %0 = vector.load %arg0[%c0, %c0_0, %c0_1] : memref<2x8x4xf32, #tpu.memory_space<vmem>>, vector<2x8x4xf32>
    %1 = vector.shape_cast %0 : vector<2x8x4xf32> to vector<16x4xf32>
    %c0_2 = arith.constant 0 : index
    %c0_3 = arith.constant 0 : index
    %2 = vector.load %arg1[%c0_2, %c0_3] : memref<4x128xf32, #tpu.memory_space<vmem>>, vector<4x128xf32>
    %cst = arith.constant dense<0.000000e+00> : vector<16x128xf32>
    %3 = tpu.matmul %1, %2, %cst {dimension_numbers = #tpu.dot_dimension_numbers<[1], [0], [0], [1], [0, 0, 1, 1], [], []>} : vector<16x4xf32>, vector<4x128xf32>, vector<16x128xf32> -> vector<16x128xf32>
    %c0_4 = arith.constant 0 : index
    %c0_5 = arith.constant 0 : index
    %c0_6 = arith.constant 0 : index
    %4 = vector.load %arg4[%c0_4, %c0_5, %c0_6] : memref<2x1x128xf32, #tpu.memory_space<vmem>>, vector<1x1x128xf32>
    %5 = vector.shape_cast %4 : vector<1x1x128xf32> to vector<1x128xf32>
    %6 = vector.broadcast %5 : vector<1x128xf32> to vector<16x128xf32>
    %7 = arith.addf %3, %6 : vector<16x128xf32>
    %8 = vector.shape_cast %7 : vector<16x128xf32> to vector<2x8x128xf32>
    %c0_7 = arith.constant 0 : index
    %c0_8 = arith.constant 0 : index
    %c0_9 = arith.constant 0 : index
    %9 = vector.load %arg3[%c0_7, %c0_8, %c0_9] : memref<2x32x128xbf16, #tpu.memory_space<vmem>>, vector<1x32x128xbf16>
    %10 = vector.shape_cast %9 : vector<1x32x128xbf16> to vector<32x128xbf16>
    %c1 = arith.constant 1 : index
    %c0_10 = arith.constant 0 : index
    %c0_11 = arith.constant 0 : index
    %11 = vector.load %arg3[%c1, %c0_10, %c0_11] : memref<2x32x128xbf16, #tpu.memory_space<vmem>>, vector<1x32x128xbf16>
    %12 = vector.shape_cast %11 : vector<1x32x128xbf16> to vector<32x128xbf16>
    %c0_12 = arith.constant 0 : index
    %c0_13 = arith.constant 0 : index
    %c0_14 = arith.constant 0 : index
    %13 = vector.load %arg2[%c0_12, %c0_13, %c0_14] : memref<1x32x128xbf16, #tpu.memory_space<vmem>>, vector<1x32x128xbf16>
    %14 = vector.shape_cast %13 : vector<1x32x128xbf16> to vector<32x128xbf16>
    %cst_15 = arith.constant 0.000000e+00 : f32
    %15 = vector.broadcast %cst_15 : f32 to vector<2x32xf32>
    %cst_16 = arith.constant 0.000000e+00 : f32
    %16 = vector.broadcast %cst_16 : f32 to vector<2x32xf32>
    %cst_17 = arith.constant 0.000000e+00 : f32
    %17 = vector.broadcast %cst_17 : f32 to vector<2x32xf32>
    %cst_18 = arith.constant 0.000000e+00 : f32
    %18 = vector.broadcast %cst_18 : f32 to vector<2x32xf32>
    %19 = vector.extract_strided_slice %8 {offsets = [0, 0, 0], sizes = [2, 1, 128], strides = [1, 1, 1]} : vector<2x8x128xf32> to vector<2x1x128xf32>
    %20 = vector.shape_cast %19 : vector<2x1x128xf32> to vector<2x128xf32>
    %21 = arith.truncf %15 : vector<2x32xf32> to vector<2x32xbf16>
    %cst_19 = arith.constant dense<0.000000e+00> : vector<2x128xf32>
    %22 = tpu.matmul %21, %10, %cst_19 {dimension_numbers = #tpu.dot_dimension_numbers<[1], [0], [0], [1], [0, 0, 1, 1], [], []>} : vector<2x32xbf16>, vector<32x128xbf16>, vector<2x128xf32> -> vector<2x128xf32>
    %23 = arith.addf %20, %22 : vector<2x128xf32>
    %cst_20 = arith.constant 0.000000e+00 : f32
    %24 = vector.broadcast %cst_20 : f32 to vector<2x128xf32>
    %25 = arith.subf %24, %23 : vector<2x128xf32>
    %26 = math.exp %25 : vector<2x128xf32>
    %cst_21 = arith.constant 1.000000e+00 : f32
    %27 = vector.broadcast %cst_21 : f32 to vector<2x128xf32>
    %28 = arith.addf %27, %26 : vector<2x128xf32>
    %29 = tpu.reciprocal %28 {approx = true} : vector<2x128xf32> -> vector<2x128xf32>
    %30 = math.tanh %23 : vector<2x128xf32>
    %31 = vector.extract_strided_slice %29 {offsets = [0, 0], sizes = [2, 32], strides = [1, 1]} : vector<2x128xf32> to vector<2x32xf32>
    %32 = vector.extract_strided_slice %29 {offsets = [0, 32], sizes = [2, 32], strides = [1, 1]} : vector<2x128xf32> to vector<2x32xf32>
    %33 = vector.extract_strided_slice %30 {offsets = [0, 64], sizes = [2, 32], strides = [1, 1]} : vector<2x128xf32> to vector<2x32xf32>
    %34 = vector.extract_strided_slice %29 {offsets = [0, 96], sizes = [2, 32], strides = [1, 1]} : vector<2x128xf32> to vector<2x32xf32>
    %35 = arith.mulf %32, %17 : vector<2x32xf32>
    %36 = arith.mulf %31, %33 : vector<2x32xf32>
    %37 = arith.addf %35, %36 : vector<2x32xf32>
    %38 = math.tanh %37 : vector<2x32xf32>
    %39 = arith.mulf %34, %38 : vector<2x32xf32>
    %40 = arith.truncf %39 : vector<2x32xf32> to vector<2x32xbf16>
    %cst_22 = arith.constant dense<0.000000e+00> : vector<2x128xf32>
    %41 = tpu.matmul %40, %14, %cst_22 {dimension_numbers = #tpu.dot_dimension_numbers<[1], [0], [0], [1], [0, 0, 1, 1], [], []>} : vector<2x32xbf16>, vector<32x128xbf16>, vector<2x128xf32> -> vector<2x128xf32>
    %c1_23 = arith.constant 1 : index
    %c0_24 = arith.constant 0 : index
    %c0_25 = arith.constant 0 : index
    %42 = vector.load %arg4[%c1_23, %c0_24, %c0_25] : memref<2x1x128xf32, #tpu.memory_space<vmem>>, vector<1x1x128xf32>
    %43 = vector.shape_cast %42 : vector<1x1x128xf32> to vector<1x128xf32>
    %44 = vector.broadcast %43 : vector<1x128xf32> to vector<2x128xf32>
    %45 = arith.addf %41, %44 : vector<2x128xf32>
    %46 = arith.truncf %16 : vector<2x32xf32> to vector<2x32xbf16>
    %cst_26 = arith.constant dense<0.000000e+00> : vector<2x128xf32>
    %47 = tpu.matmul %46, %12, %cst_26 {dimension_numbers = #tpu.dot_dimension_numbers<[1], [0], [0], [1], [0, 0, 1, 1], [], []>} : vector<2x32xbf16>, vector<32x128xbf16>, vector<2x128xf32> -> vector<2x128xf32>
    %48 = arith.addf %45, %47 : vector<2x128xf32>
    %cst_27 = arith.constant 0.000000e+00 : f32
    %49 = vector.broadcast %cst_27 : f32 to vector<2x128xf32>
    %50 = arith.subf %49, %48 : vector<2x128xf32>
    %51 = math.exp %50 : vector<2x128xf32>
    %cst_28 = arith.constant 1.000000e+00 : f32
    %52 = vector.broadcast %cst_28 : f32 to vector<2x128xf32>
    %53 = arith.addf %52, %51 : vector<2x128xf32>
    %54 = tpu.reciprocal %53 {approx = true} : vector<2x128xf32> -> vector<2x128xf32>
    %55 = math.tanh %48 : vector<2x128xf32>
    %56 = vector.extract_strided_slice %54 {offsets = [0, 0], sizes = [2, 32], strides = [1, 1]} : vector<2x128xf32> to vector<2x32xf32>
    %57 = vector.extract_strided_slice %54 {offsets = [0, 32], sizes = [2, 32], strides = [1, 1]} : vector<2x128xf32> to vector<2x32xf32>
    %58 = vector.extract_strided_slice %55 {offsets = [0, 64], sizes = [2, 32], strides = [1, 1]} : vector<2x128xf32> to vector<2x32xf32>
    %59 = vector.extract_strided_slice %54 {offsets = [0, 96], sizes = [2, 32], strides = [1, 1]} : vector<2x128xf32> to vector<2x32xf32>
    %60 = arith.mulf %57, %18 : vector<2x32xf32>
    %61 = arith.mulf %56, %58 : vector<2x32xf32>
    %62 = arith.addf %60, %61 : vector<2x32xf32>
    %63 = math.tanh %62 : vector<2x32xf32>
    %64 = arith.mulf %59, %63 : vector<2x32xf32>
    %65 = vector.extract_strided_slice %8 {offsets = [0, 1, 0], sizes = [2, 1, 128], strides = [1, 1, 1]} : vector<2x8x128xf32> to vector<2x1x128xf32>
    %66 = vector.shape_cast %65 : vector<2x1x128xf32> to vector<2x128xf32>
    %67 = arith.truncf %39 : vector<2x32xf32> to vector<2x32xbf16>
    %cst_29 = arith.constant dense<0.000000e+00> : vector<2x128xf32>
    %68 = tpu.matmul %67, %10, %cst_29 {dimension_numbers = #tpu.dot_dimension_numbers<[1], [0], [0], [1], [0, 0, 1, 1], [], []>} : vector<2x32xbf16>, vector<32x128xbf16>, vector<2x128xf32> -> vector<2x128xf32>
    %69 = arith.addf %66, %68 : vector<2x128xf32>
    %cst_30 = arith.constant 0.000000e+00 : f32
    %70 = vector.broadcast %cst_30 : f32 to vector<2x128xf32>
    %71 = arith.subf %70, %69 : vector<2x128xf32>
    %72 = math.exp %71 : vector<2x128xf32>
    %cst_31 = arith.constant 1.000000e+00 : f32
    %73 = vector.broadcast %cst_31 : f32 to vector<2x128xf32>
    %74 = arith.addf %73, %72 : vector<2x128xf32>
    %75 = tpu.reciprocal %74 {approx = true} : vector<2x128xf32> -> vector<2x128xf32>
    %76 = math.tanh %69 : vector<2x128xf32>
    %77 = vector.extract_strided_slice %75 {offsets = [0, 0], sizes = [2, 32], strides = [1, 1]} : vector<2x128xf32> to vector<2x32xf32>
    %78 = vector.extract_strided_slice %75 {offsets = [0, 32], sizes = [2, 32], strides = [1, 1]} : vector<2x128xf32> to vector<2x32xf32>
    %79 = vector.extract_strided_slice %76 {offsets = [0, 64], sizes = [2, 32], strides = [1, 1]} : vector<2x128xf32> to vector<2x32xf32>
    %80 = vector.extract_strided_slice %75 {offsets = [0, 96], sizes = [2, 32], strides = [1, 1]} : vector<2x128xf32> to vector<2x32xf32>
    %81 = arith.mulf %78, %37 : vector<2x32xf32>
    %82 = arith.mulf %77, %79 : vector<2x32xf32>
    %83 = arith.addf %81, %82 : vector<2x32xf32>
    %84 = math.tanh %83 : vector<2x32xf32>
    %85 = arith.mulf %80, %84 : vector<2x32xf32>
    %86 = arith.truncf %85 : vector<2x32xf32> to vector<2x32xbf16>
    %cst_32 = arith.constant dense<0.000000e+00> : vector<2x128xf32>
    %87 = tpu.matmul %86, %14, %cst_32 {dimension_numbers = #tpu.dot_dimension_numbers<[1], [0], [0], [1], [0, 0, 1, 1], [], []>} : vector<2x32xbf16>, vector<32x128xbf16>, vector<2x128xf32> -> vector<2x128xf32>
    %c1_33 = arith.constant 1 : index
    %c0_34 = arith.constant 0 : index
    %c0_35 = arith.constant 0 : index
    %88 = vector.load %arg4[%c1_33, %c0_34, %c0_35] : memref<2x1x128xf32, #tpu.memory_space<vmem>>, vector<1x1x128xf32>
    %89 = vector.shape_cast %88 : vector<1x1x128xf32> to vector<1x128xf32>
    %90 = vector.broadcast %89 : vector<1x128xf32> to vector<2x128xf32>
    %91 = arith.addf %87, %90 : vector<2x128xf32>
    %92 = arith.truncf %64 : vector<2x32xf32> to vector<2x32xbf16>
    %cst_36 = arith.constant dense<0.000000e+00> : vector<2x128xf32>
    %93 = tpu.matmul %92, %12, %cst_36 {dimension_numbers = #tpu.dot_dimension_numbers<[1], [0], [0], [1], [0, 0, 1, 1], [], []>} : vector<2x32xbf16>, vector<32x128xbf16>, vector<2x128xf32> -> vector<2x128xf32>
    %94 = arith.addf %91, %93 : vector<2x128xf32>
    %cst_37 = arith.constant 0.000000e+00 : f32
    %95 = vector.broadcast %cst_37 : f32 to vector<2x128xf32>
    %96 = arith.subf %95, %94 : vector<2x128xf32>
    %97 = math.exp %96 : vector<2x128xf32>
    %cst_38 = arith.constant 1.000000e+00 : f32
    %98 = vector.broadcast %cst_38 : f32 to vector<2x128xf32>
    %99 = arith.addf %98, %97 : vector<2x128xf32>
    %100 = tpu.reciprocal %99 {approx = true} : vector<2x128xf32> -> vector<2x128xf32>
    %101 = math.tanh %94 : vector<2x128xf32>
    %102 = vector.extract_strided_slice %100 {offsets = [0, 0], sizes = [2, 32], strides = [1, 1]} : vector<2x128xf32> to vector<2x32xf32>
    %103 = vector.extract_strided_slice %100 {offsets = [0, 32], sizes = [2, 32], strides = [1, 1]} : vector<2x128xf32> to vector<2x32xf32>
    %104 = vector.extract_strided_slice %101 {offsets = [0, 64], sizes = [2, 32], strides = [1, 1]} : vector<2x128xf32> to vector<2x32xf32>
    %105 = vector.extract_strided_slice %100 {offsets = [0, 96], sizes = [2, 32], strides = [1, 1]} : vector<2x128xf32> to vector<2x32xf32>
    %106 = arith.mulf %103, %62 : vector<2x32xf32>
    %107 = arith.mulf %102, %104 : vector<2x32xf32>
    %108 = arith.addf %106, %107 : vector<2x32xf32>
    %109 = math.tanh %108 : vector<2x32xf32>
    %110 = arith.mulf %105, %109 : vector<2x32xf32>
    %111 = vector.extract_strided_slice %8 {offsets = [0, 2, 0], sizes = [2, 1, 128], strides = [1, 1, 1]} : vector<2x8x128xf32> to vector<2x1x128xf32>
    %112 = vector.shape_cast %111 : vector<2x1x128xf32> to vector<2x128xf32>
    %113 = arith.truncf %85 : vector<2x32xf32> to vector<2x32xbf16>
    %cst_39 = arith.constant dense<0.000000e+00> : vector<2x128xf32>
    %114 = tpu.matmul %113, %10, %cst_39 {dimension_numbers = #tpu.dot_dimension_numbers<[1], [0], [0], [1], [0, 0, 1, 1], [], []>} : vector<2x32xbf16>, vector<32x128xbf16>, vector<2x128xf32> -> vector<2x128xf32>
    %115 = arith.addf %112, %114 : vector<2x128xf32>
    %cst_40 = arith.constant 0.000000e+00 : f32
    %116 = vector.broadcast %cst_40 : f32 to vector<2x128xf32>
    %117 = arith.subf %116, %115 : vector<2x128xf32>
    %118 = math.exp %117 : vector<2x128xf32>
    %cst_41 = arith.constant 1.000000e+00 : f32
    %119 = vector.broadcast %cst_41 : f32 to vector<2x128xf32>
    %120 = arith.addf %119, %118 : vector<2x128xf32>
    %121 = tpu.reciprocal %120 {approx = true} : vector<2x128xf32> -> vector<2x128xf32>
    %122 = math.tanh %115 : vector<2x128xf32>
    %123 = vector.extract_strided_slice %121 {offsets = [0, 0], sizes = [2, 32], strides = [1, 1]} : vector<2x128xf32> to vector<2x32xf32>
    %124 = vector.extract_strided_slice %121 {offsets = [0, 32], sizes = [2, 32], strides = [1, 1]} : vector<2x128xf32> to vector<2x32xf32>
    %125 = vector.extract_strided_slice %122 {offsets = [0, 64], sizes = [2, 32], strides = [1, 1]} : vector<2x128xf32> to vector<2x32xf32>
    %126 = vector.extract_strided_slice %121 {offsets = [0, 96], sizes = [2, 32], strides = [1, 1]} : vector<2x128xf32> to vector<2x32xf32>
    %127 = arith.mulf %124, %83 : vector<2x32xf32>
    %128 = arith.mulf %123, %125 : vector<2x32xf32>
    %129 = arith.addf %127, %128 : vector<2x32xf32>
    %130 = math.tanh %129 : vector<2x32xf32>
    %131 = arith.mulf %126, %130 : vector<2x32xf32>
    %132 = arith.truncf %131 : vector<2x32xf32> to vector<2x32xbf16>
    %cst_42 = arith.constant dense<0.000000e+00> : vector<2x128xf32>
    %133 = tpu.matmul %132, %14, %cst_42 {dimension_numbers = #tpu.dot_dimension_numbers<[1], [0], [0], [1], [0, 0, 1, 1], [], []>} : vector<2x32xbf16>, vector<32x128xbf16>, vector<2x128xf32> -> vector<2x128xf32>
    %c1_43 = arith.constant 1 : index
    %c0_44 = arith.constant 0 : index
    %c0_45 = arith.constant 0 : index
    %134 = vector.load %arg4[%c1_43, %c0_44, %c0_45] : memref<2x1x128xf32, #tpu.memory_space<vmem>>, vector<1x1x128xf32>
    %135 = vector.shape_cast %134 : vector<1x1x128xf32> to vector<1x128xf32>
    %136 = vector.broadcast %135 : vector<1x128xf32> to vector<2x128xf32>
    %137 = arith.addf %133, %136 : vector<2x128xf32>
    %138 = arith.truncf %110 : vector<2x32xf32> to vector<2x32xbf16>
    %cst_46 = arith.constant dense<0.000000e+00> : vector<2x128xf32>
    %139 = tpu.matmul %138, %12, %cst_46 {dimension_numbers = #tpu.dot_dimension_numbers<[1], [0], [0], [1], [0, 0, 1, 1], [], []>} : vector<2x32xbf16>, vector<32x128xbf16>, vector<2x128xf32> -> vector<2x128xf32>
    %140 = arith.addf %137, %139 : vector<2x128xf32>
    %cst_47 = arith.constant 0.000000e+00 : f32
    %141 = vector.broadcast %cst_47 : f32 to vector<2x128xf32>
    %142 = arith.subf %141, %140 : vector<2x128xf32>
    %143 = math.exp %142 : vector<2x128xf32>
    %cst_48 = arith.constant 1.000000e+00 : f32
    %144 = vector.broadcast %cst_48 : f32 to vector<2x128xf32>
    %145 = arith.addf %144, %143 : vector<2x128xf32>
    %146 = tpu.reciprocal %145 {approx = true} : vector<2x128xf32> -> vector<2x128xf32>
    %147 = math.tanh %140 : vector<2x128xf32>
    %148 = vector.extract_strided_slice %146 {offsets = [0, 0], sizes = [2, 32], strides = [1, 1]} : vector<2x128xf32> to vector<2x32xf32>
    %149 = vector.extract_strided_slice %146 {offsets = [0, 32], sizes = [2, 32], strides = [1, 1]} : vector<2x128xf32> to vector<2x32xf32>
    %150 = vector.extract_strided_slice %147 {offsets = [0, 64], sizes = [2, 32], strides = [1, 1]} : vector<2x128xf32> to vector<2x32xf32>
    %151 = vector.extract_strided_slice %146 {offsets = [0, 96], sizes = [2, 32], strides = [1, 1]} : vector<2x128xf32> to vector<2x32xf32>
    %152 = arith.mulf %149, %108 : vector<2x32xf32>
    %153 = arith.mulf %148, %150 : vector<2x32xf32>
    %154 = arith.addf %152, %153 : vector<2x32xf32>
    %155 = math.tanh %154 : vector<2x32xf32>
    %156 = arith.mulf %151, %155 : vector<2x32xf32>
    %157 = vector.extract_strided_slice %8 {offsets = [0, 3, 0], sizes = [2, 1, 128], strides = [1, 1, 1]} : vector<2x8x128xf32> to vector<2x1x128xf32>
    %158 = vector.shape_cast %157 : vector<2x1x128xf32> to vector<2x128xf32>
    %159 = arith.truncf %131 : vector<2x32xf32> to vector<2x32xbf16>
    %cst_49 = arith.constant dense<0.000000e+00> : vector<2x128xf32>
    %160 = tpu.matmul %159, %10, %cst_49 {dimension_numbers = #tpu.dot_dimension_numbers<[1], [0], [0], [1], [0, 0, 1, 1], [], []>} : vector<2x32xbf16>, vector<32x128xbf16>, vector<2x128xf32> -> vector<2x128xf32>
    %161 = arith.addf %158, %160 : vector<2x128xf32>
    %cst_50 = arith.constant 0.000000e+00 : f32
    %162 = vector.broadcast %cst_50 : f32 to vector<2x128xf32>
    %163 = arith.subf %162, %161 : vector<2x128xf32>
    %164 = math.exp %163 : vector<2x128xf32>
    %cst_51 = arith.constant 1.000000e+00 : f32
    %165 = vector.broadcast %cst_51 : f32 to vector<2x128xf32>
    %166 = arith.addf %165, %164 : vector<2x128xf32>
    %167 = tpu.reciprocal %166 {approx = true} : vector<2x128xf32> -> vector<2x128xf32>
    %168 = math.tanh %161 : vector<2x128xf32>
    %169 = vector.extract_strided_slice %167 {offsets = [0, 0], sizes = [2, 32], strides = [1, 1]} : vector<2x128xf32> to vector<2x32xf32>
    %170 = vector.extract_strided_slice %167 {offsets = [0, 32], sizes = [2, 32], strides = [1, 1]} : vector<2x128xf32> to vector<2x32xf32>
    %171 = vector.extract_strided_slice %168 {offsets = [0, 64], sizes = [2, 32], strides = [1, 1]} : vector<2x128xf32> to vector<2x32xf32>
    %172 = vector.extract_strided_slice %167 {offsets = [0, 96], sizes = [2, 32], strides = [1, 1]} : vector<2x128xf32> to vector<2x32xf32>
    %173 = arith.mulf %170, %129 : vector<2x32xf32>
    %174 = arith.mulf %169, %171 : vector<2x32xf32>
    %175 = arith.addf %173, %174 : vector<2x32xf32>
    %176 = math.tanh %175 : vector<2x32xf32>
    %177 = arith.mulf %172, %176 : vector<2x32xf32>
    %178 = arith.truncf %177 : vector<2x32xf32> to vector<2x32xbf16>
    %cst_52 = arith.constant dense<0.000000e+00> : vector<2x128xf32>
    %179 = tpu.matmul %178, %14, %cst_52 {dimension_numbers = #tpu.dot_dimension_numbers<[1], [0], [0], [1], [0, 0, 1, 1], [], []>} : vector<2x32xbf16>, vector<32x128xbf16>, vector<2x128xf32> -> vector<2x128xf32>
    %c1_53 = arith.constant 1 : index
    %c0_54 = arith.constant 0 : index
    %c0_55 = arith.constant 0 : index
    %180 = vector.load %arg4[%c1_53, %c0_54, %c0_55] : memref<2x1x128xf32, #tpu.memory_space<vmem>>, vector<1x1x128xf32>
    %181 = vector.shape_cast %180 : vector<1x1x128xf32> to vector<1x128xf32>
    %182 = vector.broadcast %181 : vector<1x128xf32> to vector<2x128xf32>
    %183 = arith.addf %179, %182 : vector<2x128xf32>
    %184 = arith.truncf %156 : vector<2x32xf32> to vector<2x32xbf16>
    %cst_56 = arith.constant dense<0.000000e+00> : vector<2x128xf32>
    %185 = tpu.matmul %184, %12, %cst_56 {dimension_numbers = #tpu.dot_dimension_numbers<[1], [0], [0], [1], [0, 0, 1, 1], [], []>} : vector<2x32xbf16>, vector<32x128xbf16>, vector<2x128xf32> -> vector<2x128xf32>
    %186 = arith.addf %183, %185 : vector<2x128xf32>
    %cst_57 = arith.constant 0.000000e+00 : f32
    %187 = vector.broadcast %cst_57 : f32 to vector<2x128xf32>
    %188 = arith.subf %187, %186 : vector<2x128xf32>
    %189 = math.exp %188 : vector<2x128xf32>
    %cst_58 = arith.constant 1.000000e+00 : f32
    %190 = vector.broadcast %cst_58 : f32 to vector<2x128xf32>
    %191 = arith.addf %190, %189 : vector<2x128xf32>
    %192 = tpu.reciprocal %191 {approx = true} : vector<2x128xf32> -> vector<2x128xf32>
    %193 = math.tanh %186 : vector<2x128xf32>
    %194 = vector.extract_strided_slice %192 {offsets = [0, 0], sizes = [2, 32], strides = [1, 1]} : vector<2x128xf32> to vector<2x32xf32>
    %195 = vector.extract_strided_slice %192 {offsets = [0, 32], sizes = [2, 32], strides = [1, 1]} : vector<2x128xf32> to vector<2x32xf32>
    %196 = vector.extract_strided_slice %193 {offsets = [0, 64], sizes = [2, 32], strides = [1, 1]} : vector<2x128xf32> to vector<2x32xf32>
    %197 = vector.extract_strided_slice %192 {offsets = [0, 96], sizes = [2, 32], strides = [1, 1]} : vector<2x128xf32> to vector<2x32xf32>
    %198 = arith.mulf %195, %154 : vector<2x32xf32>
    %199 = arith.mulf %194, %196 : vector<2x32xf32>
    %200 = arith.addf %198, %199 : vector<2x32xf32>
    %201 = math.tanh %200 : vector<2x32xf32>
    %202 = arith.mulf %197, %201 : vector<2x32xf32>
    %203 = vector.extract_strided_slice %8 {offsets = [0, 4, 0], sizes = [2, 1, 128], strides = [1, 1, 1]} : vector<2x8x128xf32> to vector<2x1x128xf32>
    %204 = vector.shape_cast %203 : vector<2x1x128xf32> to vector<2x128xf32>
    %205 = arith.truncf %177 : vector<2x32xf32> to vector<2x32xbf16>
    %cst_59 = arith.constant dense<0.000000e+00> : vector<2x128xf32>
    %206 = tpu.matmul %205, %10, %cst_59 {dimension_numbers = #tpu.dot_dimension_numbers<[1], [0], [0], [1], [0, 0, 1, 1], [], []>} : vector<2x32xbf16>, vector<32x128xbf16>, vector<2x128xf32> -> vector<2x128xf32>
    %207 = arith.addf %204, %206 : vector<2x128xf32>
    %cst_60 = arith.constant 0.000000e+00 : f32
    %208 = vector.broadcast %cst_60 : f32 to vector<2x128xf32>
    %209 = arith.subf %208, %207 : vector<2x128xf32>
    %210 = math.exp %209 : vector<2x128xf32>
    %cst_61 = arith.constant 1.000000e+00 : f32
    %211 = vector.broadcast %cst_61 : f32 to vector<2x128xf32>
    %212 = arith.addf %211, %210 : vector<2x128xf32>
    %213 = tpu.reciprocal %212 {approx = true} : vector<2x128xf32> -> vector<2x128xf32>
    %214 = math.tanh %207 : vector<2x128xf32>
    %215 = vector.extract_strided_slice %213 {offsets = [0, 0], sizes = [2, 32], strides = [1, 1]} : vector<2x128xf32> to vector<2x32xf32>
    %216 = vector.extract_strided_slice %213 {offsets = [0, 32], sizes = [2, 32], strides = [1, 1]} : vector<2x128xf32> to vector<2x32xf32>
    %217 = vector.extract_strided_slice %214 {offsets = [0, 64], sizes = [2, 32], strides = [1, 1]} : vector<2x128xf32> to vector<2x32xf32>
    %218 = vector.extract_strided_slice %213 {offsets = [0, 96], sizes = [2, 32], strides = [1, 1]} : vector<2x128xf32> to vector<2x32xf32>
    %219 = arith.mulf %216, %175 : vector<2x32xf32>
    %220 = arith.mulf %215, %217 : vector<2x32xf32>
    %221 = arith.addf %219, %220 : vector<2x32xf32>
    %222 = math.tanh %221 : vector<2x32xf32>
    %223 = arith.mulf %218, %222 : vector<2x32xf32>
    %224 = arith.truncf %223 : vector<2x32xf32> to vector<2x32xbf16>
    %cst_62 = arith.constant dense<0.000000e+00> : vector<2x128xf32>
    %225 = tpu.matmul %224, %14, %cst_62 {dimension_numbers = #tpu.dot_dimension_numbers<[1], [0], [0], [1], [0, 0, 1, 1], [], []>} : vector<2x32xbf16>, vector<32x128xbf16>, vector<2x128xf32> -> vector<2x128xf32>
    %c1_63 = arith.constant 1 : index
    %c0_64 = arith.constant 0 : index
    %c0_65 = arith.constant 0 : index
    %226 = vector.load %arg4[%c1_63, %c0_64, %c0_65] : memref<2x1x128xf32, #tpu.memory_space<vmem>>, vector<1x1x128xf32>
    %227 = vector.shape_cast %226 : vector<1x1x128xf32> to vector<1x128xf32>
    %228 = vector.broadcast %227 : vector<1x128xf32> to vector<2x128xf32>
    %229 = arith.addf %225, %228 : vector<2x128xf32>
    %230 = arith.truncf %202 : vector<2x32xf32> to vector<2x32xbf16>
    %cst_66 = arith.constant dense<0.000000e+00> : vector<2x128xf32>
    %231 = tpu.matmul %230, %12, %cst_66 {dimension_numbers = #tpu.dot_dimension_numbers<[1], [0], [0], [1], [0, 0, 1, 1], [], []>} : vector<2x32xbf16>, vector<32x128xbf16>, vector<2x128xf32> -> vector<2x128xf32>
    %232 = arith.addf %229, %231 : vector<2x128xf32>
    %cst_67 = arith.constant 0.000000e+00 : f32
    %233 = vector.broadcast %cst_67 : f32 to vector<2x128xf32>
    %234 = arith.subf %233, %232 : vector<2x128xf32>
    %235 = math.exp %234 : vector<2x128xf32>
    %cst_68 = arith.constant 1.000000e+00 : f32
    %236 = vector.broadcast %cst_68 : f32 to vector<2x128xf32>
    %237 = arith.addf %236, %235 : vector<2x128xf32>
    %238 = tpu.reciprocal %237 {approx = true} : vector<2x128xf32> -> vector<2x128xf32>
    %239 = math.tanh %232 : vector<2x128xf32>
    %240 = vector.extract_strided_slice %238 {offsets = [0, 0], sizes = [2, 32], strides = [1, 1]} : vector<2x128xf32> to vector<2x32xf32>
    %241 = vector.extract_strided_slice %238 {offsets = [0, 32], sizes = [2, 32], strides = [1, 1]} : vector<2x128xf32> to vector<2x32xf32>
    %242 = vector.extract_strided_slice %239 {offsets = [0, 64], sizes = [2, 32], strides = [1, 1]} : vector<2x128xf32> to vector<2x32xf32>
    %243 = vector.extract_strided_slice %238 {offsets = [0, 96], sizes = [2, 32], strides = [1, 1]} : vector<2x128xf32> to vector<2x32xf32>
    %244 = arith.mulf %241, %200 : vector<2x32xf32>
    %245 = arith.mulf %240, %242 : vector<2x32xf32>
    %246 = arith.addf %244, %245 : vector<2x32xf32>
    %247 = math.tanh %246 : vector<2x32xf32>
    %248 = arith.mulf %243, %247 : vector<2x32xf32>
    %249 = vector.extract_strided_slice %8 {offsets = [0, 5, 0], sizes = [2, 1, 128], strides = [1, 1, 1]} : vector<2x8x128xf32> to vector<2x1x128xf32>
    %250 = vector.shape_cast %249 : vector<2x1x128xf32> to vector<2x128xf32>
    %251 = arith.truncf %223 : vector<2x32xf32> to vector<2x32xbf16>
    %cst_69 = arith.constant dense<0.000000e+00> : vector<2x128xf32>
    %252 = tpu.matmul %251, %10, %cst_69 {dimension_numbers = #tpu.dot_dimension_numbers<[1], [0], [0], [1], [0, 0, 1, 1], [], []>} : vector<2x32xbf16>, vector<32x128xbf16>, vector<2x128xf32> -> vector<2x128xf32>
    %253 = arith.addf %250, %252 : vector<2x128xf32>
    %cst_70 = arith.constant 0.000000e+00 : f32
    %254 = vector.broadcast %cst_70 : f32 to vector<2x128xf32>
    %255 = arith.subf %254, %253 : vector<2x128xf32>
    %256 = math.exp %255 : vector<2x128xf32>
    %cst_71 = arith.constant 1.000000e+00 : f32
    %257 = vector.broadcast %cst_71 : f32 to vector<2x128xf32>
    %258 = arith.addf %257, %256 : vector<2x128xf32>
    %259 = tpu.reciprocal %258 {approx = true} : vector<2x128xf32> -> vector<2x128xf32>
    %260 = math.tanh %253 : vector<2x128xf32>
    %261 = vector.extract_strided_slice %259 {offsets = [0, 0], sizes = [2, 32], strides = [1, 1]} : vector<2x128xf32> to vector<2x32xf32>
    %262 = vector.extract_strided_slice %259 {offsets = [0, 32], sizes = [2, 32], strides = [1, 1]} : vector<2x128xf32> to vector<2x32xf32>
    %263 = vector.extract_strided_slice %260 {offsets = [0, 64], sizes = [2, 32], strides = [1, 1]} : vector<2x128xf32> to vector<2x32xf32>
    %264 = vector.extract_strided_slice %259 {offsets = [0, 96], sizes = [2, 32], strides = [1, 1]} : vector<2x128xf32> to vector<2x32xf32>
    %265 = arith.mulf %262, %221 : vector<2x32xf32>
    %266 = arith.mulf %261, %263 : vector<2x32xf32>
    %267 = arith.addf %265, %266 : vector<2x32xf32>
    %268 = math.tanh %267 : vector<2x32xf32>
    %269 = arith.mulf %264, %268 : vector<2x32xf32>
    %270 = arith.truncf %269 : vector<2x32xf32> to vector<2x32xbf16>
    %cst_72 = arith.constant dense<0.000000e+00> : vector<2x128xf32>
    %271 = tpu.matmul %270, %14, %cst_72 {dimension_numbers = #tpu.dot_dimension_numbers<[1], [0], [0], [1], [0, 0, 1, 1], [], []>} : vector<2x32xbf16>, vector<32x128xbf16>, vector<2x128xf32> -> vector<2x128xf32>
    %c1_73 = arith.constant 1 : index
    %c0_74 = arith.constant 0 : index
    %c0_75 = arith.constant 0 : index
    %272 = vector.load %arg4[%c1_73, %c0_74, %c0_75] : memref<2x1x128xf32, #tpu.memory_space<vmem>>, vector<1x1x128xf32>
    %273 = vector.shape_cast %272 : vector<1x1x128xf32> to vector<1x128xf32>
    %274 = vector.broadcast %273 : vector<1x128xf32> to vector<2x128xf32>
    %275 = arith.addf %271, %274 : vector<2x128xf32>
    %276 = arith.truncf %248 : vector<2x32xf32> to vector<2x32xbf16>
    %cst_76 = arith.constant dense<0.000000e+00> : vector<2x128xf32>
    %277 = tpu.matmul %276, %12, %cst_76 {dimension_numbers = #tpu.dot_dimension_numbers<[1], [0], [0], [1], [0, 0, 1, 1], [], []>} : vector<2x32xbf16>, vector<32x128xbf16>, vector<2x128xf32> -> vector<2x128xf32>
    %278 = arith.addf %275, %277 : vector<2x128xf32>
    %cst_77 = arith.constant 0.000000e+00 : f32
    %279 = vector.broadcast %cst_77 : f32 to vector<2x128xf32>
    %280 = arith.subf %279, %278 : vector<2x128xf32>
    %281 = math.exp %280 : vector<2x128xf32>
    %cst_78 = arith.constant 1.000000e+00 : f32
    %282 = vector.broadcast %cst_78 : f32 to vector<2x128xf32>
    %283 = arith.addf %282, %281 : vector<2x128xf32>
    %284 = tpu.reciprocal %283 {approx = true} : vector<2x128xf32> -> vector<2x128xf32>
    %285 = math.tanh %278 : vector<2x128xf32>
    %286 = vector.extract_strided_slice %284 {offsets = [0, 0], sizes = [2, 32], strides = [1, 1]} : vector<2x128xf32> to vector<2x32xf32>
    %287 = vector.extract_strided_slice %284 {offsets = [0, 32], sizes = [2, 32], strides = [1, 1]} : vector<2x128xf32> to vector<2x32xf32>
    %288 = vector.extract_strided_slice %285 {offsets = [0, 64], sizes = [2, 32], strides = [1, 1]} : vector<2x128xf32> to vector<2x32xf32>
    %289 = vector.extract_strided_slice %284 {offsets = [0, 96], sizes = [2, 32], strides = [1, 1]} : vector<2x128xf32> to vector<2x32xf32>
    %290 = arith.mulf %287, %246 : vector<2x32xf32>
    %291 = arith.mulf %286, %288 : vector<2x32xf32>
    %292 = arith.addf %290, %291 : vector<2x32xf32>
    %293 = math.tanh %292 : vector<2x32xf32>
    %294 = arith.mulf %289, %293 : vector<2x32xf32>
    %295 = vector.extract_strided_slice %8 {offsets = [0, 6, 0], sizes = [2, 1, 128], strides = [1, 1, 1]} : vector<2x8x128xf32> to vector<2x1x128xf32>
    %296 = vector.shape_cast %295 : vector<2x1x128xf32> to vector<2x128xf32>
    %297 = arith.truncf %269 : vector<2x32xf32> to vector<2x32xbf16>
    %cst_79 = arith.constant dense<0.000000e+00> : vector<2x128xf32>
    %298 = tpu.matmul %297, %10, %cst_79 {dimension_numbers = #tpu.dot_dimension_numbers<[1], [0], [0], [1], [0, 0, 1, 1], [], []>} : vector<2x32xbf16>, vector<32x128xbf16>, vector<2x128xf32> -> vector<2x128xf32>
    %299 = arith.addf %296, %298 : vector<2x128xf32>
    %cst_80 = arith.constant 0.000000e+00 : f32
    %300 = vector.broadcast %cst_80 : f32 to vector<2x128xf32>
    %301 = arith.subf %300, %299 : vector<2x128xf32>
    %302 = math.exp %301 : vector<2x128xf32>
    %cst_81 = arith.constant 1.000000e+00 : f32
    %303 = vector.broadcast %cst_81 : f32 to vector<2x128xf32>
    %304 = arith.addf %303, %302 : vector<2x128xf32>
    %305 = tpu.reciprocal %304 {approx = true} : vector<2x128xf32> -> vector<2x128xf32>
    %306 = math.tanh %299 : vector<2x128xf32>
    %307 = vector.extract_strided_slice %305 {offsets = [0, 0], sizes = [2, 32], strides = [1, 1]} : vector<2x128xf32> to vector<2x32xf32>
    %308 = vector.extract_strided_slice %305 {offsets = [0, 32], sizes = [2, 32], strides = [1, 1]} : vector<2x128xf32> to vector<2x32xf32>
    %309 = vector.extract_strided_slice %306 {offsets = [0, 64], sizes = [2, 32], strides = [1, 1]} : vector<2x128xf32> to vector<2x32xf32>
    %310 = vector.extract_strided_slice %305 {offsets = [0, 96], sizes = [2, 32], strides = [1, 1]} : vector<2x128xf32> to vector<2x32xf32>
    %311 = arith.mulf %308, %267 : vector<2x32xf32>
    %312 = arith.mulf %307, %309 : vector<2x32xf32>
    %313 = arith.addf %311, %312 : vector<2x32xf32>
    %314 = math.tanh %313 : vector<2x32xf32>
    %315 = arith.mulf %310, %314 : vector<2x32xf32>
    %316 = arith.truncf %315 : vector<2x32xf32> to vector<2x32xbf16>
    %cst_82 = arith.constant dense<0.000000e+00> : vector<2x128xf32>
    %317 = tpu.matmul %316, %14, %cst_82 {dimension_numbers = #tpu.dot_dimension_numbers<[1], [0], [0], [1], [0, 0, 1, 1], [], []>} : vector<2x32xbf16>, vector<32x128xbf16>, vector<2x128xf32> -> vector<2x128xf32>
    %c1_83 = arith.constant 1 : index
    %c0_84 = arith.constant 0 : index
    %c0_85 = arith.constant 0 : index
    %318 = vector.load %arg4[%c1_83, %c0_84, %c0_85] : memref<2x1x128xf32, #tpu.memory_space<vmem>>, vector<1x1x128xf32>
    %319 = vector.shape_cast %318 : vector<1x1x128xf32> to vector<1x128xf32>
    %320 = vector.broadcast %319 : vector<1x128xf32> to vector<2x128xf32>
    %321 = arith.addf %317, %320 : vector<2x128xf32>
    %322 = arith.truncf %294 : vector<2x32xf32> to vector<2x32xbf16>
    %cst_86 = arith.constant dense<0.000000e+00> : vector<2x128xf32>
    %323 = tpu.matmul %322, %12, %cst_86 {dimension_numbers = #tpu.dot_dimension_numbers<[1], [0], [0], [1], [0, 0, 1, 1], [], []>} : vector<2x32xbf16>, vector<32x128xbf16>, vector<2x128xf32> -> vector<2x128xf32>
    %324 = arith.addf %321, %323 : vector<2x128xf32>
    %cst_87 = arith.constant 0.000000e+00 : f32
    %325 = vector.broadcast %cst_87 : f32 to vector<2x128xf32>
    %326 = arith.subf %325, %324 : vector<2x128xf32>
    %327 = math.exp %326 : vector<2x128xf32>
    %cst_88 = arith.constant 1.000000e+00 : f32
    %328 = vector.broadcast %cst_88 : f32 to vector<2x128xf32>
    %329 = arith.addf %328, %327 : vector<2x128xf32>
    %330 = tpu.reciprocal %329 {approx = true} : vector<2x128xf32> -> vector<2x128xf32>
    %331 = math.tanh %324 : vector<2x128xf32>
    %332 = vector.extract_strided_slice %330 {offsets = [0, 0], sizes = [2, 32], strides = [1, 1]} : vector<2x128xf32> to vector<2x32xf32>
    %333 = vector.extract_strided_slice %330 {offsets = [0, 32], sizes = [2, 32], strides = [1, 1]} : vector<2x128xf32> to vector<2x32xf32>
    %334 = vector.extract_strided_slice %331 {offsets = [0, 64], sizes = [2, 32], strides = [1, 1]} : vector<2x128xf32> to vector<2x32xf32>
    %335 = vector.extract_strided_slice %330 {offsets = [0, 96], sizes = [2, 32], strides = [1, 1]} : vector<2x128xf32> to vector<2x32xf32>
    %336 = arith.mulf %333, %292 : vector<2x32xf32>
    %337 = arith.mulf %332, %334 : vector<2x32xf32>
    %338 = arith.addf %336, %337 : vector<2x32xf32>
    %339 = math.tanh %338 : vector<2x32xf32>
    %340 = arith.mulf %335, %339 : vector<2x32xf32>
    %341 = vector.extract_strided_slice %8 {offsets = [0, 7, 0], sizes = [2, 1, 128], strides = [1, 1, 1]} : vector<2x8x128xf32> to vector<2x1x128xf32>
    %342 = vector.shape_cast %341 : vector<2x1x128xf32> to vector<2x128xf32>
    %343 = arith.truncf %315 : vector<2x32xf32> to vector<2x32xbf16>
    %cst_89 = arith.constant dense<0.000000e+00> : vector<2x128xf32>
    %344 = tpu.matmul %343, %10, %cst_89 {dimension_numbers = #tpu.dot_dimension_numbers<[1], [0], [0], [1], [0, 0, 1, 1], [], []>} : vector<2x32xbf16>, vector<32x128xbf16>, vector<2x128xf32> -> vector<2x128xf32>
    %345 = arith.addf %342, %344 : vector<2x128xf32>
    %cst_90 = arith.constant 0.000000e+00 : f32
    %346 = vector.broadcast %cst_90 : f32 to vector<2x128xf32>
    %347 = arith.subf %346, %345 : vector<2x128xf32>
    %348 = math.exp %347 : vector<2x128xf32>
    %cst_91 = arith.constant 1.000000e+00 : f32
    %349 = vector.broadcast %cst_91 : f32 to vector<2x128xf32>
    %350 = arith.addf %349, %348 : vector<2x128xf32>
    %351 = tpu.reciprocal %350 {approx = true} : vector<2x128xf32> -> vector<2x128xf32>
    %352 = math.tanh %345 : vector<2x128xf32>
    %353 = vector.extract_strided_slice %351 {offsets = [0, 0], sizes = [2, 32], strides = [1, 1]} : vector<2x128xf32> to vector<2x32xf32>
    %354 = vector.extract_strided_slice %351 {offsets = [0, 32], sizes = [2, 32], strides = [1, 1]} : vector<2x128xf32> to vector<2x32xf32>
    %355 = vector.extract_strided_slice %352 {offsets = [0, 64], sizes = [2, 32], strides = [1, 1]} : vector<2x128xf32> to vector<2x32xf32>
    %356 = vector.extract_strided_slice %351 {offsets = [0, 96], sizes = [2, 32], strides = [1, 1]} : vector<2x128xf32> to vector<2x32xf32>
    %357 = arith.mulf %354, %313 : vector<2x32xf32>
    %358 = arith.mulf %353, %355 : vector<2x32xf32>
    %359 = arith.addf %357, %358 : vector<2x32xf32>
    %360 = math.tanh %359 : vector<2x32xf32>
    %361 = arith.mulf %356, %360 : vector<2x32xf32>
    %362 = arith.truncf %361 : vector<2x32xf32> to vector<2x32xbf16>
    %cst_92 = arith.constant dense<0.000000e+00> : vector<2x128xf32>
    %363 = tpu.matmul %362, %14, %cst_92 {dimension_numbers = #tpu.dot_dimension_numbers<[1], [0], [0], [1], [0, 0, 1, 1], [], []>} : vector<2x32xbf16>, vector<32x128xbf16>, vector<2x128xf32> -> vector<2x128xf32>
    %c1_93 = arith.constant 1 : index
    %c0_94 = arith.constant 0 : index
    %c0_95 = arith.constant 0 : index
    %364 = vector.load %arg4[%c1_93, %c0_94, %c0_95] : memref<2x1x128xf32, #tpu.memory_space<vmem>>, vector<1x1x128xf32>
    %365 = vector.shape_cast %364 : vector<1x1x128xf32> to vector<1x128xf32>
    %366 = vector.broadcast %365 : vector<1x128xf32> to vector<2x128xf32>
    %367 = arith.addf %363, %366 : vector<2x128xf32>
    %368 = arith.truncf %340 : vector<2x32xf32> to vector<2x32xbf16>
    %cst_96 = arith.constant dense<0.000000e+00> : vector<2x128xf32>
    %369 = tpu.matmul %368, %12, %cst_96 {dimension_numbers = #tpu.dot_dimension_numbers<[1], [0], [0], [1], [0, 0, 1, 1], [], []>} : vector<2x32xbf16>, vector<32x128xbf16>, vector<2x128xf32> -> vector<2x128xf32>
    %370 = arith.addf %367, %369 : vector<2x128xf32>
    %cst_97 = arith.constant 0.000000e+00 : f32
    %371 = vector.broadcast %cst_97 : f32 to vector<2x128xf32>
    %372 = arith.subf %371, %370 : vector<2x128xf32>
    %373 = math.exp %372 : vector<2x128xf32>
    %cst_98 = arith.constant 1.000000e+00 : f32
    %374 = vector.broadcast %cst_98 : f32 to vector<2x128xf32>
    %375 = arith.addf %374, %373 : vector<2x128xf32>
    %376 = tpu.reciprocal %375 {approx = true} : vector<2x128xf32> -> vector<2x128xf32>
    %377 = math.tanh %370 : vector<2x128xf32>
    %378 = vector.extract_strided_slice %376 {offsets = [0, 0], sizes = [2, 32], strides = [1, 1]} : vector<2x128xf32> to vector<2x32xf32>
    %379 = vector.extract_strided_slice %376 {offsets = [0, 32], sizes = [2, 32], strides = [1, 1]} : vector<2x128xf32> to vector<2x32xf32>
    %380 = vector.extract_strided_slice %377 {offsets = [0, 64], sizes = [2, 32], strides = [1, 1]} : vector<2x128xf32> to vector<2x32xf32>
    %381 = vector.extract_strided_slice %376 {offsets = [0, 96], sizes = [2, 32], strides = [1, 1]} : vector<2x128xf32> to vector<2x32xf32>
    %382 = arith.mulf %379, %338 : vector<2x32xf32>
    %383 = arith.mulf %378, %380 : vector<2x32xf32>
    %384 = arith.addf %382, %383 : vector<2x32xf32>
    %385 = math.tanh %384 : vector<2x32xf32>
    %386 = arith.mulf %381, %385 : vector<2x32xf32>
    %c0_99 = arith.constant 0 : index
    %c0_100 = arith.constant 0 : index
    %387 = vector.load %arg5[%c0_99, %c0_100] : memref<32x8xf32, #tpu.memory_space<vmem>>, vector<32x8xf32>
    %cst_101 = arith.constant dense<0.000000e+00> : vector<2x8xf32>
    %388 = tpu.matmul %386, %387, %cst_101 {dimension_numbers = #tpu.dot_dimension_numbers<[1], [0], [0], [1], [0, 0, 1, 1], [], []>} : vector<2x32xf32>, vector<32x8xf32>, vector<2x8xf32> -> vector<2x8xf32>
    %c0_102 = arith.constant 0 : index
    %c0_103 = arith.constant 0 : index
    %389 = vector.load %arg6[%c0_102, %c0_103] : memref<1x8xf32, #tpu.memory_space<vmem>>, vector<1x8xf32>
    %390 = vector.broadcast %389 : vector<1x8xf32> to vector<2x8xf32>
    %391 = arith.addf %388, %390 : vector<2x8xf32>
    %392 = arith.negf %391 : vector<2x8xf32>
    %393 = math.exp %392 : vector<2x8xf32>
    %cst_104 = arith.constant 1.000000e+00 : f32
    %394 = vector.broadcast %cst_104 : f32 to vector<2x8xf32>
    %395 = arith.addf %394, %393 : vector<2x8xf32>
    %396 = arith.divf %394, %395 : vector<2x8xf32>
    %c0_105 = arith.constant 0 : index
    %c0_106 = arith.constant 0 : index
    %397 = vector.load %arg7[%c0_105, %c0_106] : memref<2x8xf32, #tpu.memory_space<vmem>>, vector<2x8xf32>
    tpu.vector_store %arg7[%c0_105, %c0_106], %396 {strides = array<i32>} : memref<2x8xf32, #tpu.memory_space<vmem>>, vector<2x8xf32>,
    return
  }
}

</mosaic_0001>

<bundles_post_ra>
// kernel: lstm_forward.1
= control target key start
LH: loop header
LB: loop body
LE: loop exit
PB: predicated region body
PF: predicated region fallthrough
CT: control target
= control target key end

     0   :  { %v2643_v1 = vmov 0.0   ;;  %vm45_vm0 = vcmask 1043456   ;;  %vm38_vm1 = vcmask 31744   ;;  %vm2644_vm2 = vmmov 0   ;;  %s3168_s0 = inlined_call_operand.vmem [shape: f32[2,8,4], index: 0, kind: input, shape index: {}]   ;;  %s3169_s1 = inlined_call_operand.vmem [shape: f32[4,128], index: 1, kind: input, shape index: {}]   ;;  %s3170_s2 = inlined_call_operand.vmem [shape: bf16[1,32,128], index: 2, kind: input, shape index: {}]   ;;  %s3171_s3 = inlined_call_operand.vmem [shape: bf16[2,32,128], index: 3, kind: input, shape index: {}]   ;;  %s3172_s4 = inlined_call_operand.vmem [shape: f32[2,1,128], index: 4, kind: input, shape index: {}]   ;;  %s3173_s5 = inlined_call_operand.vmem [shape: f32[32,8], index: 5, kind: input, shape index: {}]   ;;  %s3174_s6 = inlined_call_operand.vmem [shape: f32[1,8], index: 6, kind: input, shape index: {}]   ;;  %s3175_s7 = inlined_call_operand.hbm [shape: f32[2,8], index: 7, kind: output, shape index: {}]  }
   0x1   :  { %v2692_v0 = vld [vmem:[%s3171_s3 + $0x8] sm:$0xff]   ;;  %2203 = vmatprep.subr.bf16.mxu1 %v2643_v1  ;;  %v30_v2 = vld [vmem:[%s3169_s1] sm:$0xf]  ;;  %2207 = vmatprep.mubr.msk.bf16.mxu1 %vm2644_vm2, %v2643_v1 }
   0x2   :  { %v28_v3 = vld [vmem:[%s3168_s0] sm:$0xff]  ;;  %v29_v4 = vld [vmem:[%s3168_s0 + $0x8] sm:$0xff]  ;;  %2204 = vmatpush3.bf16.msra.mxu1 %v2692_v0  ;;  %2198 = vmatprep.subr.msk.mxu0 %vm45_vm0, %v30_v2 }
   0x3   :  { %v2708_v5 = vld [vmem:[%s3171_s3] sm:$0xff]   ;;  %2199 = vmatpush3.msk.msra.mxu0 %vm45_vm0, %v30_v2  ;;  %2200 = vmatprep.mubr.msk.f32.mxu0 %vm38_vm1, %v28_v3 }
   0x4   :  { %2201 = vmatmul.mubr.msk.f32.vlgmr.msra.gmra.mxu0 %vm38_vm1, %v29_v4  ;;  %2205 = vmatprep.subr.bf16.mxu1 %v2643_v1 }
   0x5   :  { %2211 = vmatprep.subr.bf16.mxu0 %v2643_v1  ;;  %2215 = vmatprep.mubr.msk.bf16.mxu0 %vm2644_vm2, %v2643_v1 }
   0x6   :  { %2206 = vmatpush3.bf16.msra.mxu1 %v2708_v5 }
   0x7   :  { %12 = vsyncpa [#allocation3], 0  ;;  %2219 = vmatprep.subr.bf16.mxu1 %v2643_v1  ;;  %v2645_v6 = vmov 0   ;;  %v2077_v8 = vld [vmem:[%s3172_s4] ss:$0 sm:$0xff]  ;;  %s2646_s11 = smov 64  }
   0x8   :  { %s2647_s12 = smov 32   ;;  %v2744_v42 = vld [vmem:[%s3170_s2 + $0x8] sm:$0xff]   ;;  %v2749_v43 = vld [vmem:[%s3171_s3 + $0x18] sm:$0xff]   ;;  %v2756_v44 = vld [vmem:[%s3170_s2] sm:$0xff]   ;;  %vm260_vm3 = vcmask 1041409   ;;  %vm149_vm4 = vcmask 261120  }
   0x9   :  { %2208 = vmatmul.mubr.bf16.vlgmr.msra.gmra.mxu1 %v2645_v6  ;;  %2212 = vmatpush3.bf16.msra.mxu0 %v2744_v42  ;;  %v2761_v45 = vld [vmem:[%s3171_s3 + $0x10] sm:$0xff]   ;;  %vm2061_vm5 = vcmask 58368  }
   0xa   :  { %2223 = vmatprep.mubr.msk.bf16.mxu1 %vm2644_vm2, %v2643_v1  ;;  %2220 = vmatpush3.bf16.msra.mxu1 %v2749_v43 }
   0xb   :  { %2213 = vmatprep.subr.bf16.mxu0 %v2643_v1  ;;  %2221 = vmatprep.subr.bf16.mxu1 %v2643_v1 }
   0xd   :  { %2214 = vmatpush3.bf16.msra.mxu0 %v2756_v44 }
   0xe   :  { %2222 = vmatpush3.bf16.msra.mxu1 %v2761_v45  ;;  %2227 = vmatprep.subr.bf16.mxu0 %v2643_v1 }
   0xf   :  { %2235 = vmatprep.subr.bf16.mxu1 %v2643_v1 }
  0x11   :  { %2224 = vmatmul.mubr.bf16.vlgmr.msra.gmra.mxu1 %v2645_v6 }
  0x12   :  { %2236 = vmatpush3.bf16.msra.mxu1 %v2744_v42  ;;  %2239 = vmatprep.mubr.msk.bf16.mxu1 %vm2644_vm2, %v2643_v1 }
  0x13   :  { %2237 = vmatprep.subr.bf16.mxu1 %v2643_v1 }
  0x16   :  { %2238 = vmatpush3.bf16.msra.mxu1 %v2756_v44 }
  0x17   :  { %2251 = vmatprep.subr.bf16.mxu1 %v2643_v1 }
  0xc4   :  { %v2202_v7 = vpop.f32.mrf.mxu0 }
  0xc5   :  { %v2724_v10 = vadd.f32 %v2202_v7, %v2077_v8 }
  0xc6   :  { %v115_v9 = vpop.f32.mrf.mxu0 }
  0xc7   :  { %v2726_v12 = vadd.f32 %v2077_v8, %v115_v9 }
  0xc9   :  { %v187_v11 = vpop.f32.mrf.mxu1 }
  0xca   :  { %v194_v13 = vrot.slane %v187_v11, 1  ;;  %v197_v17 = vadd.f32 %v187_v11, %v2726_v12 }
  0xcb   :  { %v2209_v14 = vpop.f32.mrf.mxu1 }
  0xcc   :  { %v198_v15 = vadd.f32 %v194_v13, %v2724_v10  ;;  %v199_v22 = vsub.f32 0.0, %v197_v17 }
  0xcd   :  { %v190_v16 = vpop.f32.mrf.mxu1 }
  0xce   :  { %2418 = vtanh.f32 %v198_v15  ;;  %v200_v21 = vsub.f32 0.0, %v198_v15  ;;  %v201_v24 = vmul.f32 1.442695, %v199_v22 }
  0xcf   :  { %v2210_v18 = vpop.f32.mrf.mxu1  ;;  %2420 = vtanh.f32 %v197_v17 }
  0xd0   :  { %v203_v23 = vmul.f32 1.442695, %v200_v21 }
  0xd1   :  { %v366_v59 = vpop.f32.mrf.mxu1 }
  0xd2   :  { %2422 = vpow2.f32 %v203_v23 }
  0xd3   :  { %2424 = vpow2.f32 %v201_v24  ;;  %v2225_v60 = vpop.f32.mrf.mxu1  ;;  %v2800_v24 = vld [vmem:[%s3172_s4 + $0x1] ss:$0 sm:$0xff] }
  0xd5   :  { %v369_v61 = vpop.f32.mrf.mxu1 }
  0xd7   :  { %v2226_v62 = vpop.f32.mrf.mxu1 }
  0xdb   :  { %v2419_v19 = vpop.eup %2418 }
  0xdc   :  { %217 = vrot.lane.b32.xlu0 %v2419_v19, %s2646_s11  ;;  %v2421_v20 = vpop.eup %2420 }
  0xdf   :  { %v2423_v25 = vpop.eup %2422 }
  0xe0   :  { %215 = vrot.lane.b32.xlu0 %v2421_v20, %s2646_s11  ;;  %v206_v26 = vadd.f32 1.0, %v2423_v25  ;;  %v2425_v27 = vpop.eup %2424 }
  0xe1   :  { %v205_v28 = vadd.f32 1.0, %v2425_v27 }
  0xe2   :  { %2426 = vrcp.f32 %v206_v26 }
  0xe3   :  { %2428 = vrcp.f32 %v205_v28 }
  0xef   :  { %v2427_v29 = vpop.eup %2426 }
  0xf0   :  { %v2429_v32 = vpop.eup %2428  ;;  %v212_v35 = vmul.f32 0.0, %v2427_v29 }
  0xf1   :  { %v211_v38 = vmul.f32 0.0, %v2429_v32 }
 0x14e   :  { %v218_v30 = vpop.permute.xlu0 %217 }
 0x14f   :  { %v222_v31 = vmul.f32 %v2427_v29, %v218_v30 }
 0x151   :  { %227 = vrot.lane.b32.xlu1 %v222_v31, %s2647_s12 }
 0x152   :  { %v216_v33 = vpop.permute.xlu0 %215 }
 0x153   :  { %v221_v34 = vmul.f32 %v2429_v32, %v216_v33 }
 0x155   :  { %225 = vrot.lane.b32.xlu1 %v221_v34, %s2647_s12 }
 0x1c3   :  { %v228_v36 = vpop.permute.xlu1 %227 }
 0x1c4   :  { %v2734_v37 = vadd.f32 %v228_v36, %v212_v35 }
 0x1c6   :  { %2430 = vtanh.f32 %v2734_v37 }
 0x1c7   :  { %v226_v39 = vpop.permute.xlu1 %225 }
 0x1c8   :  { %v2737_v40 = vadd.f32 %v226_v39, %v211_v38  ;;  %v457_v38 = vrot.slane %v2734_v37, 7 }
 0x1ca   :  { %2432 = vtanh.f32 %v2737_v40  ;;  %v456_v39 = vrot.slane %v2737_v40, 7 }
 0x1d3   :  { %v2431_v41 = vpop.eup %2430 }
 0x1d4   :  { %239 = vrot.lane.b32.xlu0 %v2431_v41, %s2646_s11 }
 0x1d7   :  { %v2433_v46 = vpop.eup %2432 }
 0x1d8   :  { %237 = vrot.lane.b32.xlu1 %v2433_v46, %s2646_s11 }
 0x246   :  { %v240_v47 = vpop.permute.xlu0 %239 }
 0x247   :  { %v244_v48 = vmul.f32 %v2427_v29, %v240_v47 }
 0x249   :  { %v246_v49 = vpack.c.bf16 %v244_v48, %v244_v48 }
 0x24a   :  { %v238_v50 = vpop.permute.xlu1 %237 }
 0x24b   :  { %v258_v51 = vunpack.c.l.b16 %v246_v49  ;;  %v243_v52 = vmul.f32 %v2429_v32, %v238_v50 }
 0x24d   :  { %v245_v53 = vpack.c.bf16 %v243_v52, %v243_v52  ;;  %v259_v54 = vrot.slane %v258_v51, 7 }
 0x24f   :  { %v257_v55 = vunpack.c.l.b16 %v245_v53 }
 0x251   :  { %v261_v56 = vsel %vm260_vm3, %v259_v54, %v257_v55 }
 0x252   :  { %v262_v57 = vpack.c.b16 %v261_v56, %v261_v56 }
 0x254   :  { %263 = vrot.lane.b32.xlu0 %v262_v57, %s2647_s12 }
 0x2c6   :  { %v264_v58 = vpop.permute.xlu0 %263 }
 0x2c7   :  { %2216 = vmatmul.mubr.msk.bf16.vlgmr.msra.gmra.mxu0 %vm149_vm4, %v264_v58 }
 0x2c8   :  { %2228 = vmatpush3.bf16.msra.mxu0 %v2692_v0  ;;  %2231 = vmatprep.mubr.msk.bf16.mxu0 %vm2644_vm2, %v2643_v1 }
 0x2c9   :  { %2229 = vmatprep.subr.bf16.mxu0 %v2643_v1 }
 0x2cc   :  { %2230 = vmatpush3.bf16.msra.mxu0 %v2708_v5 }
 0x2cd   :  { %2243 = vmatprep.subr.bf16.mxu0 %v2643_v1 }
 0x2cf   :  { %2232 = vmatmul.mubr.msk.bf16.vlgmr.msra.gmra.mxu0 %vm149_vm4, %v264_v58 }
 0x2d0   :  { %2244 = vmatpush3.bf16.msra.mxu0 %v2749_v43  ;;  %2247 = vmatprep.mubr.msk.bf16.mxu0 %vm2644_vm2, %v2643_v1 }
 0x2d1   :  { %2245 = vmatprep.subr.bf16.mxu0 %v2643_v1 }
 0x2d4   :  { %2246 = vmatpush3.bf16.msra.mxu0 %v2761_v45 }
 0x2d5   :  { %2259 = vmatprep.subr.bf16.mxu0 %v2643_v1 }
 0x387   :  { %v314_v63 = vpop.f32.mrf.mxu0 }
 0x388   :  { %v315_v26 = vadd.f32 %v2800_v24, %v314_v63 }
 0x389   :  { %v2217_v2 = vpop.f32.mrf.mxu0 }
 0x38a   :  { %v372_v27 = vadd.f32 %v366_v59, %v315_v26 }
 0x38b   :  { %v317_v3 = vpop.f32.mrf.mxu0 }
 0x38c   :  { %v373_v35 = vsub.f32 0.0, %v372_v27 }
 0x38d   :  { %v2218_v4 = vpop.f32.mrf.mxu0 }
 0x38e   :  { %v374_v36 = vmul.f32 1.442695, %v373_v35 }
 0x38f   :  { %v430_v6 = vpop.f32.mrf.mxu0 }
 0x390   :  { %v437_v7 = vrot.slane %v430_v6, 7  ;;  %v441_v8 = vadd.f32 %v430_v6, %v2724_v10 }
 0x391   :  { %v2233_v9 = vpop.f32.mrf.mxu0 }
 0x392   :  { %v440_v11 = vadd.f32 %v437_v7, %v2726_v12  ;;  %2434 = vtanh.f32 %v441_v8  ;;  %v443_v17 = vsub.f32 0.0, %v441_v8 }
 0x393   :  { %v433_v13 = vpop.f32.mrf.mxu0 }
 0x394   :  { %2436 = vtanh.f32 %v440_v11  ;;  %v442_v18 = vsub.f32 0.0, %v440_v11  ;;  %v446_v19 = vmul.f32 1.442695, %v443_v17 }
 0x395   :  { %v2234_v14 = vpop.f32.mrf.mxu0 }
 0x396   :  { %v444_v20 = vmul.f32 1.442695, %v442_v18  ;;  %2438 = vpow2.f32 %v446_v19 }
 0x398   :  { %2440 = vpow2.f32 %v444_v20 }
 0x39f   :  { %v2435_v15 = vpop.eup %2434 }
 0x3a0   :  { %466 = vrot.lane.b32.xlu0 %v2435_v15, %s2646_s11 }
 0x3a1   :  { %v2437_v16 = vpop.eup %2436 }
 0x3a2   :  { %464 = vrot.lane.b32.xlu1 %v2437_v16, %s2646_s11 }
 0x3a3   :  { %v2439_v21 = vpop.eup %2438 }
 0x3a4   :  { %v449_v23 = vadd.f32 1.0, %v2439_v21 }
 0x3a5   :  { %v2441_v22 = vpop.eup %2440 }
 0x3a6   :  { %v448_v25 = vadd.f32 1.0, %v2441_v22  ;;  %2442 = vrcp.f32 %v449_v23 }
 0x3a8   :  { %2444 = vrcp.f32 %v448_v25 }
 0x3a9   :  { %2446 = vtanh.f32 %v372_v27 }
 0x3aa   :  { %2448 = vpow2.f32 %v374_v36 }
 0x3b3   :  { %v2443_v28 = vpop.eup %2442 }
 0x3b4   :  { %v461_v41 = vmul.f32 %v2443_v28, %v457_v38 }
 0x3b5   :  { %v2445_v31 = vpop.eup %2444 }
 0x3b6   :  { %v2447_v34 = vpop.eup %2446  ;;  %v460_v49 = vmul.f32 %v2445_v31, %v456_v39 }
 0x3b7   :  { %v2449_v46 = vpop.eup %2448 }
 0x3b8   :  { %v376_v51 = vadd.f32 1.0, %v2449_v46 }
 0x412   :  { %v467_v29 = vpop.permute.xlu0 %466 }
 0x413   :  { %v471_v30 = vmul.f32 %v2443_v28, %v467_v29 }
 0x414   :  { %v465_v32 = vpop.permute.xlu1 %464 }
 0x415   :  { %v470_v33 = vmul.f32 %v2445_v31, %v465_v32  ;;  %476 = vrot.lane.b32.xlu0 %v471_v30, %s2647_s12 }
 0x417   :  { %474 = vrot.lane.b32.xlu1 %v470_v33, %s2647_s12 }
 0x41b   :  { %381 = vrot.lane.b32.xlu1 %v2447_v34, %s2646_s11 }
 0x487   :  { %v477_v47 = vpop.permute.xlu0 %476 }
 0x488   :  { %v2808_v48 = vadd.f32 %v477_v47, %v461_v41 }
 0x489   :  { %v475_v50 = vpop.permute.xlu1 %474 }
 0x48a   :  { %2450 = vtanh.f32 %v2808_v48  ;;  %v2811_v52 = vadd.f32 %v475_v50, %v460_v49 }
 0x48c   :  { %2452 = vtanh.f32 %v2811_v52 }
 0x48d   :  { %2454 = vrcp.f32 %v376_v51  ;;  %v382_v40 = vpop.permute.xlu1 %381 }
 0x497   :  { %v2451_v53 = vpop.eup %2450 }
 0x498   :  { %488 = vrot.lane.b32.xlu1 %v2451_v53, %s2646_s11 }
 0x499   :  { %v2453_v37 = vpop.eup %2452 }
 0x49a   :  { %486 = vrot.lane.b32.xlu0 %v2453_v37, %s2646_s11  ;;  %v2455_v54 = vpop.eup %2454 }
 0x49b   :  { %v384_v55 = vmul.f32 %v2455_v54, %v382_v40  ;;  %v379_v62 = vmul.f32 0.0, %v2455_v54 }
 0x49e   :  { %386 = vrot.lane.b32.xlu0 %v384_v55, %s2647_s12 }
 0x50a   :  { %v489_v56 = vpop.permute.xlu1 %488 }
 0x50b   :  { %v493_v57 = vmul.f32 %v2443_v28, %v489_v56 }
 0x50c   :  { %v487_v58 = vpop.permute.xlu0 %486 }
 0x50d   :  { %v492_v59 = vmul.f32 %v2445_v31, %v487_v58  ;;  %v495_v60 = vpack.c.bf16 %v493_v57, %v493_v57 }
 0x50f   :  { %v494_v61 = vpack.c.bf16 %v492_v59, %v492_v59  ;;  %v499_v4 = vunpack.c.l.b16 %v495_v60 }
 0x510   :  { %v387_v63 = vpop.permute.xlu0 %386 }
 0x511   :  { %v498_v2 = vunpack.c.l.b16 %v494_v61  ;;  %v2817_v3 = vadd.f32 %v387_v63, %v379_v62  ;;  %v680_v61 = vrot.slane %v2811_v52, 7  ;;  %v681_v63 = vrot.slane %v2808_v48, 7 }
 0x513   :  { %v500_v6 = vrot.slane %v498_v2, 1  ;;  %2456 = vtanh.f32 %v2817_v3 }
 0x515   :  { %v501_v7 = vsel %vm260_vm3, %v499_v4, %v500_v6 }
 0x516   :  { %v502_v8 = vpack.c.b16 %v501_v7, %v501_v7 }
 0x518   :  { %503 = vrot.lane.b32.xlu1 %v502_v8, %s2647_s12 }
 0x520   :  { %v2457_v9 = vpop.eup %2456 }
 0x521   :  { %392 = vrot.lane.b32.xlu0 %v2457_v9, %s2646_s11 }
 0x58a   :  { %v504_v11 = vpop.permute.xlu1 %503 }
 0x58b   :  { %2240 = vmatmul.mubr.msk.bf16.vlgmr.msra.gmra.mxu1 %vm149_vm4, %v504_v11 }
 0x58c   :  { %2252 = vmatpush3.bf16.msra.mxu1 %v2692_v0  ;;  %2255 = vmatprep.mubr.msk.bf16.mxu1 %vm2644_vm2, %v2643_v1 }
 0x58d   :  { %2253 = vmatprep.subr.bf16.mxu1 %v2643_v1 }
 0x590   :  { %2254 = vmatpush3.bf16.msra.mxu1 %v2708_v5 }
 0x591   :  { %2267 = vmatprep.subr.bf16.mxu1 %v2643_v1 }
 0x593   :  { %2256 = vmatmul.mubr.msk.bf16.vlgmr.msra.gmra.mxu1 %vm149_vm4, %v504_v11  ;;  %v393_v13 = vpop.permute.xlu0 %392 }
 0x594   :  { %v395_v14 = vmul.f32 %v2455_v54, %v393_v13  ;;  %2268 = vmatpush3.bf16.msra.mxu1 %v2749_v43  ;;  %2271 = vmatprep.mubr.msk.bf16.mxu1 %vm2644_vm2, %v2643_v1 }
 0x595   :  { %2269 = vmatprep.subr.bf16.mxu1 %v2643_v1 }
 0x596   :  { %v548_v15 = vpack.c.bf16 %v395_v14, %v395_v14 }
 0x598   :  { %550 = vrot.lane.b32.xlu1 %v548_v15, %s2647_s12  ;;  %2270 = vmatpush3.bf16.msra.mxu1 %v2761_v45 }
 0x599   :  { %2283 = vmatprep.subr.bf16.mxu1 %v2643_v1 }
 0x60a   :  { %v551_v16 = vpop.permute.xlu1 %550 }
 0x60b   :  { %2248 = vmatmul.mubr.msk.bf16.vlgmr.msra.gmra.mxu0 %vm149_vm4, %v551_v16 }
 0x60c   :  { %2260 = vmatpush3.bf16.msra.mxu0 %v2744_v42  ;;  %2263 = vmatprep.mubr.msk.bf16.mxu0 %vm2644_vm2, %v2643_v1 }
 0x60d   :  { %2261 = vmatprep.subr.bf16.mxu0 %v2643_v1 }
 0x610   :  { %2262 = vmatpush3.bf16.msra.mxu0 %v2756_v44 }
 0x611   :  { %2275 = vmatprep.subr.bf16.mxu0 %v2643_v1 }
 0x64b   :  { %v542_v17 = vpop.f32.mrf.mxu1 }
 0x64c   :  { %v543_v46 = vadd.f32 %v2800_v24, %v542_v17 }
 0x64d   :  { %v2241_v18 = vpop.f32.mrf.mxu1 }
 0x64f   :  { %v545_v19 = vpop.f32.mrf.mxu1 }
 0x651   :  { %v2242_v20 = vpop.f32.mrf.mxu1 }
 0x653   :  { %v653_v21 = vpop.f32.mrf.mxu1 }
 0x654   :  { %v660_v22 = vrot.slane %v653_v21, 6  ;;  %v661_v23 = vrot.slane %v653_v21, 7 }
 0x655   :  { %v2257_v25 = vpop.f32.mrf.mxu1 }
 0x656   :  { %v664_v26 = vadd.f32 %v660_v22, %v2726_v12  ;;  %v665_v27 = vadd.f32 %v661_v23, %v2724_v10 }
 0x657   :  { %v656_v28 = vpop.f32.mrf.mxu1 }
 0x658   :  { %2458 = vtanh.f32 %v664_v26  ;;  %v666_v32 = vsub.f32 0.0, %v664_v26  ;;  %v667_v33 = vsub.f32 0.0, %v665_v27 }
 0x659   :  { %2460 = vtanh.f32 %v665_v27  ;;  %v2258_v29 = vpop.f32.mrf.mxu1 }
 0x65a   :  { %v668_v34 = vmul.f32 1.442695, %v666_v32  ;;  %v670_v35 = vmul.f32 1.442695, %v667_v33 }
 0x65c   :  { %2462 = vpow2.f32 %v668_v34 }
 0x65d   :  { %2464 = vpow2.f32 %v670_v35 }
 0x665   :  { %v2459_v30 = vpop.eup %2458 }
 0x666   :  { %v2461_v31 = vpop.eup %2460  ;;  %688 = vrot.lane.b32.xlu0 %v2459_v30, %s2646_s11 }
 0x667   :  { %690 = vrot.lane.b32.xlu1 %v2461_v31, %s2646_s11 }
 0x669   :  { %v2463_v36 = vpop.eup %2462 }
 0x66a   :  { %v2465_v38 = vpop.eup %2464  ;;  %v672_v39 = vadd.f32 1.0, %v2463_v36 }
 0x66b   :  { %v673_v41 = vadd.f32 1.0, %v2465_v38 }
 0x66c   :  { %2466 = vrcp.f32 %v672_v39 }
 0x66d   :  { %2468 = vrcp.f32 %v673_v41 }
 0x679   :  { %v2467_v37 = vpop.eup %2466 }
 0x67a   :  { %v2469_v54 = vpop.eup %2468  ;;  %v684_v2 = vmul.f32 %v2467_v37, %v680_v61 }
 0x67b   :  { %v685_v4 = vmul.f32 %v2469_v54, %v681_v63 }
 0x6cb   :  { %v589_v47 = vpop.f32.mrf.mxu0 }
 0x6cc   :  { %v595_v49 = vadd.f32 %v589_v47, %v543_v46 }
 0x6cd   :  { %v2249_v50 = vpop.f32.mrf.mxu0 }
 0x6ce   :  { %2470 = vtanh.f32 %v595_v49  ;;  %v596_v59 = vsub.f32 0.0, %v595_v49 }
 0x6cf   :  { %v592_v51 = vpop.f32.mrf.mxu0 }
 0x6d0   :  { %v597_v60 = vmul.f32 1.442695, %v596_v59 }
 0x6d1   :  { %v2250_v53 = vpop.f32.mrf.mxu0 }
 0x6d2   :  { %2472 = vpow2.f32 %v597_v60 }
 0x6d8   :  { %v689_v40 = vpop.permute.xlu0 %688 }
 0x6d9   :  { %v691_v55 = vpop.permute.xlu1 %690  ;;  %v694_v56 = vmul.f32 %v2467_v37, %v689_v40 }
 0x6da   :  { %v695_v57 = vmul.f32 %v2469_v54, %v691_v55 }
 0x6db   :  { %698 = vrot.lane.b32.xlu0 %v694_v56, %s2647_s12  ;;  %v2471_v58 = vpop.eup %2470 }
 0x6dc   :  { %700 = vrot.lane.b32.xlu1 %v695_v57, %s2647_s12 }
 0x6df   :  { %604 = vrot.lane.b32.xlu0 %v2471_v58, %s2646_s11  ;;  %v2473_v62 = vpop.eup %2472 }
 0x6e0   :  { %v599_v7 = vadd.f32 1.0, %v2473_v62 }
 0x74d   :  { %v699_v6 = vpop.permute.xlu0 %698 }
 0x74e   :  { %v701_v8 = vpop.permute.xlu1 %700  ;;  %v2855_v9 = vadd.f32 %v699_v6, %v684_v2 }
 0x74f   :  { %v2857_v11 = vadd.f32 %v701_v8, %v685_v4 }
 0x750   :  { %2474 = vtanh.f32 %v2855_v9 }
 0x751   :  { %2476 = vtanh.f32 %v2857_v11  ;;  %v605_v14 = vpop.permute.xlu0 %604 }
 0x752   :  { %2478 = vrcp.f32 %v599_v7 }
 0x75d   :  { %v2475_v13 = vpop.eup %2474 }
 0x75e   :  { %v2477_v52 = vpop.eup %2476  ;;  %710 = vrot.lane.b32.xlu1 %v2475_v13, %s2646_s11 }
 0x75f   :  { %v2479_v48 = vpop.eup %2478  ;;  %712 = vrot.lane.b32.xlu0 %v2477_v52, %s2646_s11 }
 0x760   :  { %v607_v15 = vmul.f32 %v2479_v48, %v605_v14  ;;  %v602_v21 = vmul.f32 %v2479_v48, %v2817_v3 }
 0x762   :  { %609 = vrot.lane.b32.xlu1 %v607_v15, %s2647_s12 }
 0x7d0   :  { %v711_v16 = vpop.permute.xlu1 %710 }
 0x7d1   :  { %v716_v17 = vmul.f32 %v2467_v37, %v711_v16  ;;  %v713_v18 = vpop.permute.xlu0 %712 }
 0x7d2   :  { %v717_v19 = vmul.f32 %v2469_v54, %v713_v18 }
 0x7d3   :  { %v718_v20 = vpack.c.bf16 %v716_v17, %v716_v17 }
 0x7d4   :  { %v719_v22 = vpack.c.bf16 %v717_v19, %v717_v19  ;;  %v610_v23 = vpop.permute.xlu1 %609 }
 0x7d5   :  { %v722_v25 = vunpack.c.l.b16 %v718_v20  ;;  %v2865_v26 = vadd.f32 %v610_v23, %v602_v21 }
 0x7d6   :  { %v723_v27 = vunpack.c.l.b16 %v719_v22  ;;  %v905_v22 = vrot.slane %v2855_v9, 7 }
 0x7d7   :  { %v724_v28 = vrot.slane %v722_v25, 2  ;;  %2480 = vtanh.f32 %v2865_v26  ;;  %v906_v25 = vrot.slane %v2857_v11, 7 }
 0x7d8   :  { %v725_v29 = vrot.slane %v723_v27, 1 }
 0x7da   :  { %v726_v30 = vsel %vm260_vm3, %v725_v29, %v724_v28 }
 0x7db   :  { %v727_v31 = vpack.c.b16 %v726_v30, %v726_v30 }
 0x7dd   :  { %728 = vrot.lane.b32.xlu0 %v727_v31, %s2647_s12 }
 0x7e4   :  { %v2481_v32 = vpop.eup %2480 }
 0x7e5   :  { %615 = vrot.lane.b32.xlu1 %v2481_v32, %s2646_s11 }
 0x84f   :  { %v729_v33 = vpop.permute.xlu0 %728 }
 0x850   :  { %2264 = vmatmul.mubr.msk.bf16.vlgmr.msra.gmra.mxu0 %vm149_vm4, %v729_v33 }
 0x851   :  { %2276 = vmatpush3.bf16.msra.mxu0 %v2692_v0  ;;  %2279 = vmatprep.mubr.msk.bf16.mxu0 %vm2644_vm2, %v2643_v1 }
 0x852   :  { %2277 = vmatprep.subr.bf16.mxu0 %v2643_v1 }
 0x855   :  { %2278 = vmatpush3.bf16.msra.mxu0 %v2708_v5 }
 0x856   :  { %2291 = vmatprep.subr.bf16.mxu0 %v2643_v1 }
 0x857   :  { %v616_v3 = vpop.permute.xlu1 %615 }
 0x858   :  { %2280 = vmatmul.mubr.msk.bf16.vlgmr.msra.gmra.mxu0 %vm149_vm4, %v729_v33  ;;  %v618_v34 = vmul.f32 %v2479_v48, %v616_v3 }
 0x859   :  { %2292 = vmatpush3.bf16.msra.mxu0 %v2749_v43  ;;  %2295 = vmatprep.mubr.msk.bf16.mxu0 %vm2644_vm2, %v2643_v1 }
 0x85a   :  { %v773_v35 = vpack.c.bf16 %v618_v34, %v618_v34  ;;  %2293 = vmatprep.subr.bf16.mxu0 %v2643_v1 }
 0x85c   :  { %775 = vrot.lane.b32.xlu0 %v773_v35, %s2647_s12 }
 0x85d   :  { %2294 = vmatpush3.bf16.msra.mxu0 %v2761_v45 }
 0x85e   :  { %2307 = vmatprep.subr.bf16.mxu0 %v2643_v1 }
 0x8ce   :  { %v776_v36 = vpop.permute.xlu0 %775 }
 0x8cf   :  { %2272 = vmatmul.mubr.msk.bf16.vlgmr.msra.gmra.mxu1 %vm149_vm4, %v776_v36 }
 0x8d0   :  { %2284 = vmatpush3.bf16.msra.mxu1 %v2744_v42  ;;  %2287 = vmatprep.mubr.msk.bf16.mxu1 %vm2644_vm2, %v2643_v1 }
 0x8d1   :  { %2285 = vmatprep.subr.bf16.mxu1 %v2643_v1 }
 0x8d4   :  { %2286 = vmatpush3.bf16.msra.mxu1 %v2756_v44 }
 0x8d5   :  { %2299 = vmatprep.subr.bf16.mxu1 %v2643_v1 }
 0x910   :  { %v767_v38 = vpop.f32.mrf.mxu0 }
 0x911   :  { %v768_v6 = vadd.f32 %v2800_v24, %v767_v38 }
 0x912   :  { %v2265_v39 = vpop.f32.mrf.mxu0 }
 0x914   :  { %v770_v41 = vpop.f32.mrf.mxu0 }
 0x916   :  { %v2266_v46 = vpop.f32.mrf.mxu0 }
 0x918   :  { %v878_v47 = vpop.f32.mrf.mxu0 }
 0x919   :  { %v885_v49 = vrot.slane %v878_v47, 5  ;;  %v886_v50 = vrot.slane %v878_v47, 6 }
 0x91a   :  { %v2281_v51 = vpop.f32.mrf.mxu0 }
 0x91b   :  { %v889_v53 = vadd.f32 %v885_v49, %v2726_v12  ;;  %v890_v37 = vadd.f32 %v886_v50, %v2724_v10 }
 0x91c   :  { %v881_v40 = vpop.f32.mrf.mxu0 }
 0x91d   :  { %2482 = vtanh.f32 %v889_v53  ;;  %v891_v57 = vsub.f32 0.0, %v889_v53  ;;  %v892_v58 = vsub.f32 0.0, %v890_v37 }
 0x91e   :  { %2484 = vtanh.f32 %v890_v37  ;;  %v2282_v54 = vpop.f32.mrf.mxu0 }
 0x91f   :  { %v893_v59 = vmul.f32 1.442695, %v891_v57  ;;  %v895_v60 = vmul.f32 1.442695, %v892_v58 }
 0x921   :  { %2486 = vpow2.f32 %v893_v59 }
 0x922   :  { %2488 = vpow2.f32 %v895_v60 }
 0x92a   :  { %v2483_v55 = vpop.eup %2482 }
 0x92b   :  { %v2485_v56 = vpop.eup %2484  ;;  %913 = vrot.lane.b32.xlu1 %v2483_v55, %s2646_s11 }
 0x92c   :  { %915 = vrot.lane.b32.xlu0 %v2485_v56, %s2646_s11 }
 0x92e   :  { %v2487_v61 = vpop.eup %2486 }
 0x92f   :  { %v2489_v62 = vpop.eup %2488  ;;  %v897_v63 = vadd.f32 1.0, %v2487_v61 }
 0x930   :  { %v898_v2 = vadd.f32 1.0, %v2489_v62 }
 0x931   :  { %2490 = vrcp.f32 %v897_v63 }
 0x932   :  { %2492 = vrcp.f32 %v898_v2 }
 0x93e   :  { %v2491_v52 = vpop.eup %2490 }
 0x93f   :  { %v2493_v15 = vpop.eup %2492  ;;  %v909_v27 = vmul.f32 %v2491_v52, %v905_v22 }
 0x940   :  { %v910_v28 = vmul.f32 %v2493_v15, %v906_v25 }
 0x98f   :  { %v814_v4 = vpop.f32.mrf.mxu1 }
 0x990   :  { %v820_v8 = vadd.f32 %v814_v4, %v768_v6 }
 0x991   :  { %v2273_v7 = vpop.f32.mrf.mxu1 }
 0x992   :  { %2494 = vtanh.f32 %v820_v8  ;;  %v821_v20 = vsub.f32 0.0, %v820_v8 }
 0x993   :  { %v817_v13 = vpop.f32.mrf.mxu1 }
 0x994   :  { %v822_v21 = vmul.f32 1.442695, %v821_v20 }
 0x995   :  { %v2274_v14 = vpop.f32.mrf.mxu1 }
 0x996   :  { %2496 = vpow2.f32 %v822_v21 }
 0x99d   :  { %v914_v48 = vpop.permute.xlu1 %913 }
 0x99e   :  { %v916_v16 = vpop.permute.xlu0 %915  ;;  %v919_v17 = vmul.f32 %v2491_v52, %v914_v48 }
 0x99f   :  { %v920_v18 = vmul.f32 %v2493_v15, %v916_v16  ;;  %v2495_v19 = vpop.eup %2494 }
 0x9a0   :  { %923 = vrot.lane.b32.xlu1 %v919_v17, %s2647_s12 }
 0x9a1   :  { %925 = vrot.lane.b32.xlu0 %v920_v18, %s2647_s12 }
 0x9a3   :  { %v2497_v23 = vpop.eup %2496 }
 0x9a4   :  { %829 = vrot.lane.b32.xlu1 %v2495_v19, %s2646_s11  ;;  %v824_v30 = vadd.f32 1.0, %v2497_v23 }
 0xa12   :  { %v924_v29 = vpop.permute.xlu1 %923 }
 0xa13   :  { %v926_v31 = vpop.permute.xlu0 %925  ;;  %v2903_v32 = vadd.f32 %v924_v29, %v909_v27 }
 0xa14   :  { %v2905_v33 = vadd.f32 %v926_v31, %v910_v28 }
 0xa15   :  { %2498 = vtanh.f32 %v2903_v32 }
 0xa16   :  { %2500 = vtanh.f32 %v2905_v33  ;;  %v830_v34 = vpop.permute.xlu1 %829 }
 0xa17   :  { %2502 = vrcp.f32 %v824_v30 }
 0xa22   :  { %v2499_v3 = vpop.eup %2498 }
 0xa23   :  { %v2501_v9 = vpop.eup %2500  ;;  %935 = vrot.lane.b32.xlu0 %v2499_v3, %s2646_s11 }
 0xa24   :  { %v2503_v11 = vpop.eup %2502  ;;  %937 = vrot.lane.b32.xlu1 %v2501_v9, %s2646_s11 }
 0xa25   :  { %v832_v35 = vmul.f32 %v2503_v11, %v830_v34  ;;  %v827_v47 = vmul.f32 %v2503_v11, %v2865_v26 }
 0xa27   :  { %834 = vrot.lane.b32.xlu0 %v832_v35, %s2647_s12 }
 0xa95   :  { %v936_v36 = vpop.permute.xlu0 %935 }
 0xa96   :  { %v938_v38 = vpop.permute.xlu1 %937  ;;  %v941_v39 = vmul.f32 %v2491_v52, %v936_v36 }
 0xa97   :  { %v942_v41 = vmul.f32 %v2493_v15, %v938_v38 }
 0xa98   :  { %v943_v46 = vpack.c.bf16 %v941_v39, %v941_v39 }
 0xa99   :  { %v944_v49 = vpack.c.bf16 %v942_v41, %v942_v41  ;;  %v835_v50 = vpop.permute.xlu0 %834 }
 0xa9a   :  { %v947_v51 = vunpack.c.l.b16 %v943_v46  ;;  %v2913_v53 = vadd.f32 %v835_v50, %v827_v47 }
 0xa9b   :  { %v948_v37 = vunpack.c.l.b16 %v944_v49  ;;  %v1130_v49 = vrot.slane %v2903_v32, 7 }
 0xa9c   :  { %v949_v40 = vrot.slane %v947_v51, 3  ;;  %2504 = vtanh.f32 %v2913_v53 }
 0xa9d   :  { %v950_v54 = vrot.slane %v948_v37, 2 }
 0xa9f   :  { %v951_v55 = vsel %vm260_vm3, %v950_v54, %v949_v40  ;;  %v1131_v54 = vrot.slane %v2905_v33, 7 }
 0xaa0   :  { %v952_v56 = vpack.c.b16 %v951_v55, %v951_v55 }
 0xaa2   :  { %953 = vrot.lane.b32.xlu1 %v952_v56, %s2647_s12 }
 0xaa9   :  { %v2505_v57 = vpop.eup %2504 }
 0xaaa   :  { %840 = vrot.lane.b32.xlu0 %v2505_v57, %s2646_s11 }
 0xb14   :  { %v954_v58 = vpop.permute.xlu1 %953 }
 0xb15   :  { %2288 = vmatmul.mubr.msk.bf16.vlgmr.msra.gmra.mxu1 %vm149_vm4, %v954_v58 }
 0xb16   :  { %2300 = vmatpush3.bf16.msra.mxu1 %v2692_v0  ;;  %2303 = vmatprep.mubr.msk.bf16.mxu1 %vm2644_vm2, %v2643_v1 }
 0xb17   :  { %2301 = vmatprep.subr.bf16.mxu1 %v2643_v1 }
 0xb1a   :  { %2302 = vmatpush3.bf16.msra.mxu1 %v2708_v5 }
 0xb1b   :  { %2315 = vmatprep.subr.bf16.mxu1 %v2643_v1 }
 0xb1c   :  { %v841_v26 = vpop.permute.xlu0 %840 }
 0xb1d   :  { %2304 = vmatmul.mubr.msk.bf16.vlgmr.msra.gmra.mxu1 %vm149_vm4, %v954_v58  ;;  %v843_v59 = vmul.f32 %v2503_v11, %v841_v26 }
 0xb1e   :  { %2316 = vmatpush3.bf16.msra.mxu1 %v2749_v43  ;;  %2319 = vmatprep.mubr.msk.bf16.mxu1 %vm2644_vm2, %v2643_v1 }
 0xb1f   :  { %v998_v60 = vpack.c.bf16 %v843_v59, %v843_v59  ;;  %2317 = vmatprep.subr.bf16.mxu1 %v2643_v1 }
 0xb21   :  { %1000 = vrot.lane.b32.xlu1 %v998_v60, %s2647_s12 }
 0xb22   :  { %2318 = vmatpush3.bf16.msra.mxu1 %v2761_v45 }
 0xb23   :  { %2331 = vmatprep.subr.bf16.mxu1 %v2643_v1 }
 0xb93   :  { %v1001_v0 = vpop.permute.xlu1 %1000 }
 0xb94   :  { %2296 = vmatmul.mubr.msk.bf16.vlgmr.msra.gmra.mxu0 %vm149_vm4, %v1001_v0 }
 0xb95   :  { %2308 = vmatpush3.bf16.msra.mxu0 %v2744_v42  ;;  %2311 = vmatprep.mubr.msk.bf16.mxu0 %vm2644_vm2, %v2643_v1 }
 0xb96   :  { %2309 = vmatprep.subr.bf16.mxu0 %v2643_v1 }
 0xb99   :  { %2310 = vmatpush3.bf16.msra.mxu0 %v2756_v44 }
 0xb9a   :  { %2323 = vmatprep.subr.bf16.mxu0 %v2643_v1 }
 0xbd5   :  { %v992_v5 = vpop.f32.mrf.mxu1 }
 0xbd6   :  { %v993_v23 = vadd.f32 %v2800_v24, %v992_v5 }
 0xbd7   :  { %v2289_v61 = vpop.f32.mrf.mxu1 }
 0xbd9   :  { %v995_v62 = vpop.f32.mrf.mxu1 }
 0xbdb   :  { %v2290_v63 = vpop.f32.mrf.mxu1 }
 0xbdd   :  { %v1103_v2 = vpop.f32.mrf.mxu1 }
 0xbde   :  { %v1110_v4 = vrot.slane %v1103_v2, 4  ;;  %v1111_v6 = vrot.slane %v1103_v2, 5 }
 0xbdf   :  { %v2305_v7 = vpop.f32.mrf.mxu1 }
 0xbe0   :  { %v1114_v8 = vadd.f32 %v1110_v4, %v2726_v12  ;;  %v1115_v13 = vadd.f32 %v1111_v6, %v2724_v10 }
 0xbe1   :  { %v1106_v14 = vpop.f32.mrf.mxu1 }
 0xbe2   :  { %2506 = vtanh.f32 %v1114_v8  ;;  %v1116_v16 = vsub.f32 0.0, %v1114_v8  ;;  %v1117_v17 = vsub.f32 0.0, %v1115_v13 }
 0xbe3   :  { %2508 = vtanh.f32 %v1115_v13  ;;  %v2306_v52 = vpop.f32.mrf.mxu1 }
 0xbe4   :  { %v1118_v18 = vmul.f32 1.442695, %v1116_v16  ;;  %v1120_v19 = vmul.f32 1.442695, %v1117_v17 }
 0xbe6   :  { %2510 = vpow2.f32 %v1118_v18  ;;  %v2972_v18 = vld [vmem:[%s3171_s3 + $0x8] sm:$0xff]  }
 0xbe7   :  { %2512 = vpow2.f32 %v1120_v19  ;;  %v2981_v19 = vld [vmem:[%s3171_s3] sm:$0xff]  }
 0xbef   :  { %v2507_v48 = vpop.eup %2506 }
 0xbf0   :  { %v2509_v15 = vpop.eup %2508  ;;  %1138 = vrot.lane.b32.xlu0 %v2507_v48, %s2646_s11 }
 0xbf1   :  { %1140 = vrot.lane.b32.xlu1 %v2509_v15, %s2646_s11 }
 0xbf3   :  { %v2511_v20 = vpop.eup %2510 }
 0xbf4   :  { %v1122_v21 = vadd.f32 1.0, %v2511_v20  ;;  %v2513_v22 = vpop.eup %2512 }
 0xbf5   :  { %v1123_v27 = vadd.f32 1.0, %v2513_v22 }
 0xbf6   :  { %2514 = vrcp.f32 %v1122_v21 }
 0xc03   :  { %v2515_v3 = vpop.eup %2514 }
 0xc04   :  { %v1134_v50 = vmul.f32 %v2515_v3, %v1130_v49 }
 0xc54   :  { %v1039_v25 = vpop.f32.mrf.mxu0 }
 0xc55   :  { %v1045_v28 = vadd.f32 %v1039_v25, %v993_v23 }
 0xc56   :  { %v2297_v29 = vpop.f32.mrf.mxu0 }
 0xc57   :  { %2516 = vtanh.f32 %v1045_v28  ;;  %v1046_v39 = vsub.f32 0.0, %v1045_v28 }
 0xc58   :  { %v1042_v30 = vpop.f32.mrf.mxu0  ;;  %2518 = vrcp.f32 %v1123_v27 }
 0xc59   :  { %v1047_v41 = vmul.f32 1.442695, %v1046_v39 }
 0xc5a   :  { %v2298_v31 = vpop.f32.mrf.mxu0 }
 0xc5b   :  { %2520 = vpow2.f32 %v1047_v41 }
 0xc62   :  { %v1139_v34 = vpop.permute.xlu0 %1138 }
 0xc63   :  { %v1144_v9 = vmul.f32 %v2515_v3, %v1139_v34  ;;  %v1141_v35 = vpop.permute.xlu1 %1140 }
 0xc64   :  { %v2517_v11 = vpop.eup %2516 }
 0xc65   :  { %1148 = vrot.lane.b32.xlu1 %v1144_v9, %s2647_s12  ;;  %1054 = vrot.lane.b32.xlu0 %v2517_v11, %s2646_s11  ;;  %v2519_v36 = vpop.eup %2518 }
 0xc66   :  { %v1145_v38 = vmul.f32 %v2519_v36, %v1141_v35  ;;  %v1135_v57 = vmul.f32 %v2519_v36, %v1131_v54 }
 0xc68   :  { %v2521_v46 = vpop.eup %2520 }
 0xc69   :  { %1150 = vrot.lane.b32.xlu0 %v1145_v38, %s2647_s12  ;;  %v1049_v47 = vadd.f32 1.0, %v2521_v46 }
 0xc6b   :  { %2522 = vrcp.f32 %v1049_v47 }
 0xc78   :  { %v2523_v51 = vpop.eup %2522 }
 0xc79   :  { %v1052_v33 = vmul.f32 %v2523_v51, %v2913_v53 }
 0xcd7   :  { %v1149_v37 = vpop.permute.xlu1 %1148  ;;  %v1055_v40 = vpop.permute.xlu0 %1054 }
 0xcd8   :  { %v2951_v55 = vadd.f32 %v1149_v37, %v1134_v50  ;;  %v1057_v56 = vmul.f32 %v2523_v51, %v1055_v40 }
 0xcda   :  { %2524 = vtanh.f32 %v2951_v55  ;;  %1059 = vrot.lane.b32.xlu1 %v1057_v56, %s2647_s12 }
 0xcdb   :  { %v1151_v58 = vpop.permute.xlu0 %1150 }
 0xcdc   :  { %v2955_v26 = vadd.f32 %v1151_v58, %v1135_v57 }
 0xcde   :  { %2526 = vtanh.f32 %v2955_v26 }
 0xce7   :  { %v2525_v32 = vpop.eup %2524 }
 0xce8   :  { %1160 = vrot.lane.b32.xlu0 %v2525_v32, %s2646_s11 }
 0xceb   :  { %v2527_v59 = vpop.eup %2526 }
 0xcec   :  { %1162 = vrot.lane.b32.xlu1 %v2527_v59, %s2646_s11 }
 0xd4c   :  { %v1060_v60 = vpop.permute.xlu1 %1059 }
 0xd4d   :  { %v2961_v0 = vadd.f32 %v1060_v60, %v1052_v33 }
 0xd4f   :  { %2528 = vtanh.f32 %v2961_v0 }
 0xd5a   :  { %v1161_v5 = vpop.permute.xlu0 %1160 }
 0xd5b   :  { %v1166_v61 = vmul.f32 %v2515_v3, %v1161_v5 }
 0xd5c   :  { %v2529_v62 = vpop.eup %2528 }
 0xd5d   :  { %v1168_v63 = vpack.c.bf16 %v1166_v61, %v1166_v61  ;;  %1065 = vrot.lane.b32.xlu0 %v2529_v62, %s2646_s11 }
 0xd5e   :  { %v1163_v2 = vpop.permute.xlu1 %1162 }
 0xd5f   :  { %v1167_v4 = vmul.f32 %v2519_v36, %v1163_v2  ;;  %v1172_v6 = vunpack.c.l.b16 %v1168_v63  ;;  %v1355_v2 = vrot.slane %v2951_v55, 7 }
 0xd61   :  { %v1169_v7 = vpack.c.bf16 %v1167_v4, %v1167_v4  ;;  %v1174_v13 = vrot.slane %v1172_v6, 4  ;;  %v1356_v4 = vrot.slane %v2955_v26, 7 }
 0xd63   :  { %v1173_v8 = vunpack.c.l.b16 %v1169_v7 }
 0xd65   :  { %v1175_v14 = vrot.slane %v1173_v8, 3 }
 0xd67   :  { %v1176_v53 = vsel %vm260_vm3, %v1175_v14, %v1174_v13 }
 0xd68   :  { %v1177_v52 = vpack.c.b16 %v1176_v53, %v1176_v53 }
 0xd6a   :  { %1178 = vrot.lane.b32.xlu1 %v1177_v52, %s2647_s12 }
 0xdcf   :  { %v1066_v48 = vpop.permute.xlu0 %1065 }
 0xdd0   :  { %v1068_v15 = vmul.f32 %v2523_v51, %v1066_v48 }
 0xdd2   :  { %v1223_v16 = vpack.c.bf16 %v1068_v15, %v1068_v15 }
 0xdd4   :  { %1225 = vrot.lane.b32.xlu0 %v1223_v16, %s2647_s12 }
 0xddc   :  { %v1179_v17 = vpop.permute.xlu1 %1178 }
 0xddd   :  { %2312 = vmatmul.mubr.msk.bf16.vlgmr.msra.gmra.mxu0 %vm149_vm4, %v1179_v17 }
 0xdde   :  { %2324 = vmatpush3.bf16.msra.mxu0 %v2972_v18  ;;  %2327 = vmatprep.mubr.msk.bf16.mxu0 %vm2644_vm2, %v2643_v1 }
 0xddf   :  { %2325 = vmatprep.subr.bf16.mxu0 %v2643_v1 }
 0xde2   :  { %2326 = vmatpush3.bf16.msra.mxu0 %v2981_v19 }
 0xde3   :  { %2339 = vmatprep.subr.bf16.mxu0 %v2643_v1 }
 0xde5   :  { %2328 = vmatmul.mubr.msk.bf16.vlgmr.msra.gmra.mxu0 %vm149_vm4, %v1179_v17 }
 0xde6   :  { %2340 = vmatpush3.bf16.msra.mxu0 %v2749_v43  ;;  %2343 = vmatprep.mubr.msk.bf16.mxu0 %vm2644_vm2, %v2643_v1 }
 0xde7   :  { %2341 = vmatprep.subr.bf16.mxu0 %v2643_v1 }
 0xdea   :  { %2342 = vmatpush3.bf16.msra.mxu0 %v2761_v45 }
 0xdeb   :  { %2355 = vmatprep.subr.bf16.mxu0 %v2643_v1 }
 0xe46   :  { %v1226_v20 = vpop.permute.xlu0 %1225 }
 0xe47   :  { %2320 = vmatmul.mubr.msk.bf16.vlgmr.msra.gmra.mxu1 %vm149_vm4, %v1226_v20 }
 0xe48   :  { %2332 = vmatpush3.bf16.msra.mxu1 %v2744_v42  ;;  %2335 = vmatprep.mubr.msk.bf16.mxu1 %vm2644_vm2, %v2643_v1 }
 0xe49   :  { %2333 = vmatprep.subr.bf16.mxu1 %v2643_v1 }
 0xe4c   :  { %2334 = vmatpush3.bf16.msra.mxu1 %v2756_v44 }
 0xe4d   :  { %2347 = vmatprep.subr.bf16.mxu1 %v2643_v1 }
 0xe9d   :  { %v1217_v43 = vpop.f32.mrf.mxu0 }
 0xe9e   :  { %v1218_v36 = vadd.f32 %v2800_v24, %v1217_v43 }
 0xe9f   :  { %v2313_v21 = vpop.f32.mrf.mxu0 }
 0xea1   :  { %v1220_v22 = vpop.f32.mrf.mxu0 }
 0xea3   :  { %v2314_v45 = vpop.f32.mrf.mxu0 }
 0xea5   :  { %v1328_v23 = vpop.f32.mrf.mxu0 }
 0xea6   :  { %v1335_v25 = vrot.slane %v1328_v23, 3  ;;  %v1336_v27 = vrot.slane %v1328_v23, 4 }
 0xea7   :  { %v2329_v28 = vpop.f32.mrf.mxu0 }
 0xea8   :  { %v1339_v29 = vadd.f32 %v1335_v25, %v2726_v12  ;;  %v1340_v42 = vadd.f32 %v1336_v27, %v2724_v10 }
 0xea9   :  { %v1331_v30 = vpop.f32.mrf.mxu0 }
 0xeaa   :  { %2530 = vtanh.f32 %v1339_v29  ;;  %v1341_v34 = vsub.f32 0.0, %v1339_v29  ;;  %v1342_v9 = vsub.f32 0.0, %v1340_v42 }
 0xeab   :  { %2532 = vtanh.f32 %v1340_v42  ;;  %v2330_v31 = vpop.f32.mrf.mxu0 }
 0xeac   :  { %v1343_v11 = vmul.f32 1.442695, %v1341_v34  ;;  %v1345_v35 = vmul.f32 1.442695, %v1342_v9  ;;  %v3046_v34 = vld [vmem:[%s3171_s3 + $0x10] sm:$0xff]  }
 0xeae   :  { %2534 = vpow2.f32 %v1343_v11  ;;  %v3054_v11 = vld [vmem:[%s3170_s2 + $0x8] sm:$0xff]  }
 0xeaf   :  { %2536 = vpow2.f32 %v1345_v35  ;;  %v3063_v35 = vld [vmem:[%s3170_s2] sm:$0xff]  }
 0xeb7   :  { %v2531_v3 = vpop.eup %2530 }
 0xeb8   :  { %v2533_v44 = vpop.eup %2532  ;;  %1363 = vrot.lane.b32.xlu1 %v2531_v3, %s2646_s11 }
 0xeb9   :  { %1365 = vrot.lane.b32.xlu0 %v2533_v44, %s2646_s11  ;;  %v3037_v44 = vld [vmem:[%s3171_s3 + $0x18] sm:$0xff]  }
 0xebb   :  { %v2535_v49 = vpop.eup %2534 }
 0xebc   :  { %v2537_v50 = vpop.eup %2536  ;;  %v1347_v37 = vadd.f32 1.0, %v2535_v49 }
 0xebd   :  { %v1348_v40 = vadd.f32 1.0, %v2537_v50 }
 0xf07   :  { %v1264_v38 = vpop.f32.mrf.mxu1 }
 0xf08   :  { %v1270_v39 = vadd.f32 %v1264_v38, %v1218_v36 }
 0xf09   :  { %v2321_v41 = vpop.f32.mrf.mxu1 }
 0xf0a   :  { %2538 = vtanh.f32 %v1270_v39  ;;  %v1271_v59 = vsub.f32 0.0, %v1270_v39 }
 0xf0b   :  { %v1267_v46 = vpop.f32.mrf.mxu1  ;;  %2540 = vrcp.f32 %v1347_v37 }
 0xf0c   :  { %2542 = vrcp.f32 %v1348_v40  ;;  %v1272_v33 = vmul.f32 1.442695, %v1271_v59 }
 0xf0d   :  { %v2322_v47 = vpop.f32.mrf.mxu1 }
 0xf0e   :  { %2544 = vpow2.f32 %v1272_v33 }
 0xf17   :  { %v2539_v51 = vpop.eup %2538 }
 0xf18   :  { %1279 = vrot.lane.b32.xlu1 %v2539_v51, %s2646_s11  ;;  %v2541_v54 = vpop.eup %2540 }
 0xf19   :  { %v2543_v24 = vpop.eup %2542  ;;  %v1359_v6 = vmul.f32 %v2541_v54, %v1355_v2 }
 0xf1a   :  { %v1360_v7 = vmul.f32 %v2543_v24, %v1356_v4 }
 0xf1b   :  { %v2545_v60 = vpop.eup %2544 }
 0xf1c   :  { %v1274_v5 = vadd.f32 1.0, %v2545_v60 }
 0xf1e   :  { %2546 = vrcp.f32 %v1274_v5 }
 0xf2a   :  { %v1364_v56 = vpop.permute.xlu1 %1363 }
 0xf2b   :  { %v1366_v57 = vpop.permute.xlu0 %1365  ;;  %v1369_v58 = vmul.f32 %v2541_v54, %v1364_v56  ;;  %v2547_v61 = vpop.eup %2546 }
 0xf2c   :  { %v1370_v32 = vmul.f32 %v2543_v24, %v1366_v57  ;;  %v1277_v55 = vmul.f32 %v2547_v61, %v2961_v0  ;;  %v3074_v57 = vld [vmem:[%s3172_s4 + $0x1] ss:$0 sm:$0xff] }
 0xf2d   :  { %1373 = vrot.lane.b32.xlu0 %v1369_v58, %s2647_s12 }
 0xf2e   :  { %1375 = vrot.lane.b32.xlu1 %v1370_v32, %s2647_s12 }
 0xf8a   :  { %v1280_v62 = vpop.permute.xlu1 %1279 }
 0xf8b   :  { %v1282_v63 = vmul.f32 %v2547_v61, %v1280_v62 }
 0xf8d   :  { %1284 = vrot.lane.b32.xlu0 %v1282_v63, %s2647_s12 }
 0xf9f   :  { %v1374_v8 = vpop.permute.xlu0 %1373 }
 0xfa0   :  { %v1376_v13 = vpop.permute.xlu1 %1375  ;;  %v3010_v14 = vadd.f32 %v1374_v8, %v1359_v6 }
 0xfa1   :  { %v3012_v53 = vadd.f32 %v1376_v13, %v1360_v7 }
 0xfa2   :  { %2548 = vtanh.f32 %v3010_v14 }
 0xfa3   :  { %2550 = vtanh.f32 %v3012_v53 }
 0xfaf   :  { %v2549_v52 = vpop.eup %2548 }
 0xfb0   :  { %v2551_v48 = vpop.eup %2550  ;;  %1385 = vrot.lane.b32.xlu1 %v2549_v52, %s2646_s11 }
 0xfb1   :  { %1387 = vrot.lane.b32.xlu0 %v2551_v48, %s2646_s11 }
 0xfff   :  { %v1285_v26 = vpop.permute.xlu0 %1284 }
0x1000   :  { %v3019_v15 = vadd.f32 %v1285_v26, %v1277_v55 }
0x1002   :  { %2552 = vtanh.f32 %v3019_v15 }
0x100f   :  { %v2553_v16 = vpop.eup %2552 }
0x1010   :  { %1290 = vrot.lane.b32.xlu1 %v2553_v16, %s2646_s11 }
0x1022   :  { %v1386_v17 = vpop.permute.xlu1 %1385 }
0x1023   :  { %v1388_v20 = vpop.permute.xlu0 %1387  ;;  %v1391_v43 = vmul.f32 %v2541_v54, %v1386_v17 }
0x1024   :  { %v1392_v21 = vmul.f32 %v2543_v24, %v1388_v20 }
0x1025   :  { %v1393_v22 = vpack.c.bf16 %v1391_v43, %v1391_v43 }
0x1026   :  { %v1394_v45 = vpack.c.bf16 %v1392_v21, %v1392_v21 }
0x1027   :  { %v1397_v23 = vunpack.c.l.b16 %v1393_v22 }
0x1028   :  { %v1398_v25 = vunpack.c.l.b16 %v1394_v45 }
0x1029   :  { %v1399_v27 = vrot.slane %v1397_v23, 5 }
0x102a   :  { %v1400_v28 = vrot.slane %v1398_v25, 4 }
0x102c   :  { %v1401_v0 = vsel %vm260_vm3, %v1400_v28, %v1399_v27  ;;  %v1580_v27 = vrot.slane %v3010_v14, 7  ;;  %v1581_v28 = vrot.slane %v3012_v53, 7 }
0x102d   :  { %v1402_v29 = vpack.c.b16 %v1401_v0, %v1401_v0 }
0x102f   :  { %1403 = vrot.lane.b32.xlu0 %v1402_v29, %s2647_s12 }
0x1082   :  { %v1291_v42 = vpop.permute.xlu1 %1290 }
0x1083   :  { %v1293_v30 = vmul.f32 %v2547_v61, %v1291_v42 }
0x1085   :  { %v1448_v31 = vpack.c.bf16 %v1293_v30, %v1293_v30 }
0x1087   :  { %1450 = vrot.lane.b32.xlu1 %v1448_v31, %s2647_s12 }
0x10a1   :  { %v1404_v3 = vpop.permute.xlu0 %1403 }
0x10a2   :  { %2336 = vmatmul.mubr.msk.bf16.vlgmr.msra.gmra.mxu1 %vm149_vm4, %v1404_v3 }
0x10a3   :  { %2348 = vmatpush3.bf16.msra.mxu1 %v2972_v18  ;;  %2351 = vmatprep.mubr.msk.bf16.mxu1 %vm2644_vm2, %v2643_v1 }
0x10a4   :  { %2349 = vmatprep.subr.bf16.mxu1 %v2643_v1 }
0x10a7   :  { %2350 = vmatpush3.bf16.msra.mxu1 %v2981_v19 }
0x10a8   :  { %2363 = vmatprep.subr.bf16.mxu1 %v2643_v1 }
0x10aa   :  { %2352 = vmatmul.mubr.msk.bf16.vlgmr.msra.gmra.mxu1 %vm149_vm4, %v1404_v3 }
0x10ab   :  { %2364 = vmatpush3.bf16.msra.mxu1 %v3037_v44  ;;  %2367 = vmatprep.mubr.msk.bf16.mxu1 %vm2644_vm2, %v2643_v1 }
0x10ac   :  { %2365 = vmatprep.subr.bf16.mxu1 %v2643_v1 }
0x10af   :  { %2366 = vmatpush3.bf16.msra.mxu1 %v3046_v34 }
0x10b0   :  { %2379 = vmatprep.subr.bf16.mxu1 %v2643_v1 }
0x10f9   :  { %v1451_v9 = vpop.permute.xlu1 %1450 }
0x10fa   :  { %2344 = vmatmul.mubr.msk.bf16.vlgmr.msra.gmra.mxu0 %vm149_vm4, %v1451_v9 }
0x10fb   :  { %2356 = vmatpush3.bf16.msra.mxu0 %v3054_v11  ;;  %2359 = vmatprep.mubr.msk.bf16.mxu0 %vm2644_vm2, %v2643_v1 }
0x10fc   :  { %2357 = vmatprep.subr.bf16.mxu0 %v2643_v1 }
0x10ff   :  { %2358 = vmatpush3.bf16.msra.mxu0 %v3063_v35 }
0x1100   :  { %2371 = vmatprep.subr.bf16.mxu0 %v2643_v1 }
0x1162   :  { %v1442_v36 = vpop.f32.mrf.mxu1 }
0x1163   :  { %v1443_v58 = vadd.f32 %v3074_v57, %v1442_v36 }
0x1164   :  { %v2337_v38 = vpop.f32.mrf.mxu1 }
0x1166   :  { %v1445_v39 = vpop.f32.mrf.mxu1 }
0x1168   :  { %v2338_v41 = vpop.f32.mrf.mxu1 }
0x116a   :  { %v1553_v46 = vpop.f32.mrf.mxu1 }
0x116b   :  { %v1560_v47 = vrot.slane %v1553_v46, 2  ;;  %v1561_v49 = vrot.slane %v1553_v46, 3 }
0x116c   :  { %v2353_v50 = vpop.f32.mrf.mxu1 }
0x116d   :  { %v1564_v51 = vadd.f32 %v1560_v47, %v2726_v12  ;;  %v1565_v37 = vadd.f32 %v1561_v49, %v2724_v10 }
0x116e   :  { %v1556_v40 = vpop.f32.mrf.mxu1 }
0x116f   :  { %2554 = vtanh.f32 %v1564_v51  ;;  %v1566_v61 = vsub.f32 0.0, %v1564_v51  ;;  %v1567_v62 = vsub.f32 0.0, %v1565_v37 }
0x1170   :  { %2556 = vtanh.f32 %v1565_v37  ;;  %v2354_v54 = vpop.f32.mrf.mxu1 }
0x1171   :  { %v1568_v2 = vmul.f32 1.442695, %v1566_v61  ;;  %v1570_v4 = vmul.f32 1.442695, %v1567_v62 }
0x117c   :  { %v2555_v56 = vpop.eup %2554 }
0x117d   :  { %v2557_v24 = vpop.eup %2556  ;;  %1588 = vrot.lane.b32.xlu0 %v2555_v56, %s2646_s11 }
0x117e   :  { %1590 = vrot.lane.b32.xlu1 %v2557_v24, %s2646_s11 }
0x11ba   :  { %v1489_v32 = vpop.f32.mrf.mxu0 }
0x11bb   :  { %v1495_v59 = vadd.f32 %v1489_v32, %v1443_v58 }
0x11bc   :  { %v2345_v33 = vpop.f32.mrf.mxu0 }
0x11bd   :  { %2558 = vtanh.f32 %v1495_v59  ;;  %v1496_v20 = vsub.f32 0.0, %v1495_v59 }
0x11be   :  { %v1492_v60 = vpop.f32.mrf.mxu0  ;;  %2560 = vpow2.f32 %v1568_v2 }
0x11bf   :  { %2562 = vpow2.f32 %v1570_v4  ;;  %v1497_v43 = vmul.f32 1.442695, %v1496_v20 }
0x11c0   :  { %v2346_v5 = vpop.f32.mrf.mxu0 }
0x11ca   :  { %v2559_v63 = vpop.eup %2558 }
0x11cb   :  { %1504 = vrot.lane.b32.xlu0 %v2559_v63, %s2646_s11  ;;  %v2561_v6 = vpop.eup %2560 }
0x11cc   :  { %v2563_v7 = vpop.eup %2562  ;;  %v1572_v8 = vadd.f32 1.0, %v2561_v6 }
0x11cd   :  { %v1573_v13 = vadd.f32 1.0, %v2563_v7 }
0x11ce   :  { %2564 = vrcp.f32 %v1572_v8 }
0x11cf   :  { %2566 = vrcp.f32 %v1573_v13 }
0x11d0   :  { %2568 = vpow2.f32 %v1497_v43 }
0x11db   :  { %v2565_v52 = vpop.eup %2564 }
0x11dc   :  { %v2567_v55 = vpop.eup %2566  ;;  %v1584_v0 = vmul.f32 %v2565_v52, %v1580_v27 }
0x11dd   :  { %v2569_v21 = vpop.eup %2568  ;;  %v1585_v42 = vmul.f32 %v2567_v55, %v1581_v28 }
0x11de   :  { %v1499_v22 = vadd.f32 1.0, %v2569_v21 }
0x11e0   :  { %2570 = vrcp.f32 %v1499_v22 }
0x11ed   :  { %v2571_v45 = vpop.eup %2570 }
0x11ee   :  { %v1502_v14 = vmul.f32 %v2571_v45, %v3019_v15 }
0x11ef   :  { %v1589_v48 = vpop.permute.xlu0 %1588 }
0x11f0   :  { %v1594_v26 = vmul.f32 %v2565_v52, %v1589_v48  ;;  %v1591_v16 = vpop.permute.xlu1 %1590 }
0x11f1   :  { %v1595_v17 = vmul.f32 %v2567_v55, %v1591_v16 }
0x11f2   :  { %1598 = vrot.lane.b32.xlu1 %v1594_v26, %s2647_s12 }
0x11f3   :  { %1600 = vrot.lane.b32.xlu0 %v1595_v17, %s2647_s12 }
0x123d   :  { %v1505_v23 = vpop.permute.xlu0 %1504 }
0x123e   :  { %v1507_v25 = vmul.f32 %v2571_v45, %v1505_v23 }
0x1240   :  { %1509 = vrot.lane.b32.xlu1 %v1507_v25, %s2647_s12 }
0x1264   :  { %v1599_v29 = vpop.permute.xlu1 %1598 }
0x1265   :  { %v3083_v30 = vadd.f32 %v1599_v29, %v1584_v0  ;;  %v1601_v31 = vpop.permute.xlu0 %1600 }
0x1266   :  { %v3085_v3 = vadd.f32 %v1601_v31, %v1585_v42 }
0x1267   :  { %2572 = vtanh.f32 %v3083_v30 }
0x1268   :  { %2574 = vtanh.f32 %v3085_v3 }
0x1274   :  { %v2573_v9 = vpop.eup %2572 }
0x1275   :  { %v2575_v36 = vpop.eup %2574  ;;  %1610 = vrot.lane.b32.xlu0 %v2573_v9, %s2646_s11 }
0x1276   :  { %1612 = vrot.lane.b32.xlu1 %v2575_v36, %s2646_s11 }
0x12b2   :  { %v1510_v53 = vpop.permute.xlu1 %1509 }
0x12b3   :  { %v3092_v38 = vadd.f32 %v1510_v53, %v1502_v14 }
0x12b5   :  { %2576 = vtanh.f32 %v3092_v38 }
0x12c2   :  { %v2577_v39 = vpop.eup %2576 }
0x12c3   :  { %1515 = vrot.lane.b32.xlu0 %v2577_v39, %s2646_s11 }
0x12e7   :  { %v1611_v41 = vpop.permute.xlu0 %1610 }
0x12e8   :  { %v1616_v46 = vmul.f32 %v2565_v52, %v1611_v41  ;;  %v1613_v47 = vpop.permute.xlu1 %1612  ;;  %v1805_v41 = vrot.slane %v3083_v30, 7 }
0x12e9   :  { %v1617_v49 = vmul.f32 %v2567_v55, %v1613_v47 }
0x12ea   :  { %v1618_v50 = vpack.c.bf16 %v1616_v46, %v1616_v46  ;;  %v1806_v46 = vrot.slane %v3085_v3, 7 }
0x12eb   :  { %v1619_v51 = vpack.c.bf16 %v1617_v49, %v1617_v49 }
0x12ec   :  { %v1622_v37 = vunpack.c.l.b16 %v1618_v50 }
0x12ed   :  { %v1623_v40 = vunpack.c.l.b16 %v1619_v51 }
0x12ee   :  { %v1624_v54 = vrot.slane %v1622_v37, 6 }
0x12ef   :  { %v1625_v56 = vrot.slane %v1623_v40, 5 }
0x12f1   :  { %v1626_v15 = vsel %vm260_vm3, %v1625_v56, %v1624_v54 }
0x12f2   :  { %v1627_v24 = vpack.c.b16 %v1626_v15, %v1626_v15 }
0x12f4   :  { %1628 = vrot.lane.b32.xlu1 %v1627_v24, %s2647_s12 }
0x1335   :  { %v1516_v58 = vpop.permute.xlu0 %1515 }
0x1336   :  { %v1518_v32 = vmul.f32 %v2571_v45, %v1516_v58 }
0x1338   :  { %v1673_v59 = vpack.c.bf16 %v1518_v32, %v1518_v32 }
0x133a   :  { %1675 = vrot.lane.b32.xlu0 %v1673_v59, %s2647_s12 }
0x1366   :  { %v1629_v33 = vpop.permute.xlu1 %1628 }
0x1367   :  { %2360 = vmatmul.mubr.msk.bf16.vlgmr.msra.gmra.mxu0 %vm149_vm4, %v1629_v33 }
0x1368   :  { %2372 = vmatpush3.bf16.msra.mxu0 %v2972_v18  ;;  %2375 = vmatprep.mubr.msk.bf16.mxu0 %vm2644_vm2, %v2643_v1 }
0x1369   :  { %2373 = vmatprep.subr.bf16.mxu0 %v2643_v1 }
0x136c   :  { %2374 = vmatpush3.bf16.msra.mxu0 %v2981_v19 }
0x136d   :  { %2387 = vmatprep.subr.bf16.mxu0 %v2643_v1 }
0x136f   :  { %2376 = vmatmul.mubr.msk.bf16.vlgmr.msra.gmra.mxu0 %vm149_vm4, %v1629_v33 }
0x1370   :  { %2388 = vmatpush3.bf16.msra.mxu0 %v3037_v44  ;;  %2391 = vmatprep.mubr.msk.bf16.mxu0 %vm2644_vm2, %v2643_v1 }
0x1371   :  { %2389 = vmatprep.subr.bf16.mxu0 %v2643_v1 }
0x1374   :  { %2390 = vmatpush3.bf16.msra.mxu0 %v3046_v34 }
0x13ac   :  { %v1676_v18 = vpop.permute.xlu0 %1675 }
0x13ad   :  { %2368 = vmatmul.mubr.msk.bf16.vlgmr.msra.gmra.mxu1 %vm149_vm4, %v1676_v18 }
0x13ae   :  { %2380 = vmatpush3.bf16.msra.mxu1 %v3054_v11  ;;  %2383 = vmatprep.mubr.msk.bf16.mxu1 %vm2644_vm2, %v2643_v1 }
0x13af   :  { %2381 = vmatprep.subr.bf16.mxu1 %v2643_v1 }
0x13b2   :  { %2382 = vmatpush3.bf16.msra.mxu1 %v3063_v35 }
0x13b3   :  { %2395 = vmatprep.subr.mxu1 %v2643_v1 }
0x1427   :  { %v1667_v19 = vpop.f32.mrf.mxu0 }
0x1428   :  { %v1668_v8 = vadd.f32 %v3074_v57, %v1667_v19 }
0x1429   :  { %v2361_v44 = vpop.f32.mrf.mxu0 }
0x142b   :  { %v1670_v60 = vpop.f32.mrf.mxu0 }
0x142d   :  { %v2362_v5 = vpop.f32.mrf.mxu0 }
0x142f   :  { %v1778_v61 = vpop.f32.mrf.mxu0 }
0x1430   :  { %v1785_v34 = vrot.slane %v1778_v61, 1  ;;  %v1786_v62 = vrot.slane %v1778_v61, 2 }
0x1431   :  { %v2377_v63 = vpop.f32.mrf.mxu0 }
0x1432   :  { %v1789_v2 = vadd.f32 %v1785_v34, %v2726_v12  ;;  %v1790_v11 = vadd.f32 %v1786_v62, %v2724_v10 }
0x1433   :  { %v1781_v4 = vpop.f32.mrf.mxu0 }
0x1434   :  { %2578 = vtanh.f32 %v1789_v2  ;;  %v1791_v10 = vsub.f32 0.0, %v1789_v2  ;;  %v1792_v16 = vsub.f32 0.0, %v1790_v11 }
0x1435   :  { %2580 = vtanh.f32 %v1790_v11  ;;  %v2378_v6 = vpop.f32.mrf.mxu0 }
0x1436   :  { %v1793_v17 = vmul.f32 1.442695, %v1791_v10  ;;  %v1795_v20 = vmul.f32 1.442695, %v1792_v16 }
0x1441   :  { %v2579_v7 = vpop.eup %2578 }
0x1442   :  { %v2581_v35 = vpop.eup %2580  ;;  %1813 = vrot.lane.b32.xlu1 %v2579_v7, %s2646_s11 }
0x1443   :  { %1815 = vrot.lane.b32.xlu0 %v2581_v35, %s2646_s11 }
0x146d   :  { %v1714_v13 = vpop.f32.mrf.mxu1 }
0x146e   :  { %v1720_v52 = vadd.f32 %v1714_v13, %v1668_v8 }
0x146f   :  { %v2369_v48 = vpop.f32.mrf.mxu1 }
0x1470   :  { %2582 = vtanh.f32 %v1720_v52  ;;  %v1721_v42 = vsub.f32 0.0, %v1720_v52 }
0x1471   :  { %v1717_v55 = vpop.f32.mrf.mxu1  ;;  %2584 = vpow2.f32 %v1793_v17 }
0x1472   :  { %2586 = vpow2.f32 %v1795_v20  ;;  %v1722_v31 = vmul.f32 1.442695, %v1721_v42 }
0x1473   :  { %v2370_v12 = vpop.f32.mrf.mxu1 }
0x147d   :  { %v2583_v26 = vpop.eup %2582 }
0x147e   :  { %1729 = vrot.lane.b32.xlu1 %v2583_v26, %s2646_s11  ;;  %v2585_v43 = vpop.eup %2584 }
0x147f   :  { %v2587_v21 = vpop.eup %2586  ;;  %v1797_v22 = vadd.f32 1.0, %v2585_v43 }
0x1480   :  { %v1798_v45 = vadd.f32 1.0, %v2587_v21 }
0x1481   :  { %2588 = vrcp.f32 %v1797_v22 }
0x1482   :  { %2590 = vrcp.f32 %v1798_v45 }
0x1483   :  { %2592 = vpow2.f32 %v1722_v31 }
0x148e   :  { %v2589_v23 = vpop.eup %2588 }
0x148f   :  { %v2591_v27 = vpop.eup %2590  ;;  %v1809_v47 = vmul.f32 %v2589_v23, %v1805_v41 }
0x1490   :  { %v2593_v9 = vpop.eup %2592  ;;  %v1810_v49 = vmul.f32 %v2591_v27, %v1806_v46 }
0x1491   :  { %v1724_v36 = vadd.f32 1.0, %v2593_v9 }
0x1493   :  { %2594 = vrcp.f32 %v1724_v36 }
0x14a0   :  { %v2595_v14 = vpop.eup %2594 }
0x14a1   :  { %v1727_v15 = vmul.f32 %v2595_v14, %v3092_v38 }
0x14b4   :  { %v1814_v25 = vpop.permute.xlu1 %1813 }
0x14b5   :  { %v1816_v28 = vpop.permute.xlu0 %1815  ;;  %v1819_v0 = vmul.f32 %v2589_v23, %v1814_v25 }
0x14b6   :  { %v1820_v29 = vmul.f32 %v2591_v27, %v1816_v28  ;;  %v1971_v28 = vld [vmem:[%s3173_s5 + $0x10] sm:$0xff] }
0x14b7   :  { %1823 = vrot.lane.b32.xlu0 %v1819_v0, %s2647_s12  ;;  %v1970_v0 = vld [vmem:[%s3173_s5 + $0x8] sm:$0xff] }
0x14b8   :  { %1825 = vrot.lane.b32.xlu1 %v1820_v29, %s2647_s12  ;;  %v1969_v29 = vld [vmem:[%s3173_s5] sm:$0xff] }
0x14f0   :  { %v1730_v53 = vpop.permute.xlu1 %1729 }
0x14f1   :  { %v1732_v39 = vmul.f32 %v2595_v14, %v1730_v53 }
0x14f3   :  { %1734 = vrot.lane.b32.xlu0 %v1732_v39, %s2647_s12 }
0x1529   :  { %v1824_v50 = vpop.permute.xlu0 %1823 }
0x152a   :  { %v1826_v51 = vpop.permute.xlu1 %1825  ;;  %v1829_v37 = vadd.f32 %v1824_v50, %v1809_v47 }
0x152b   :  { %v1830_v40 = vadd.f32 %v1826_v51, %v1810_v49 }
0x152c   :  { %2596 = vtanh.f32 %v1829_v37 }
0x152d   :  { %2598 = vtanh.f32 %v1830_v40 }
0x1539   :  { %v2597_v54 = vpop.eup %2596 }
0x153a   :  { %v2599_v56 = vpop.eup %2598  ;;  %1835 = vrot.lane.b32.xlu1 %v2597_v54, %s2646_s11 }
0x153b   :  { %1837 = vrot.lane.b32.xlu0 %v2599_v56, %s2646_s11 }
0x1565   :  { %v1735_v24 = vpop.permute.xlu0 %1734 }
0x1566   :  { %v1737_v30 = vadd.f32 %v1735_v24, %v1727_v15 }
0x1568   :  { %2600 = vtanh.f32 %v1737_v30 }
0x1575   :  { %v2601_v3 = vpop.eup %2600 }
0x1576   :  { %1740 = vrot.lane.b32.xlu1 %v2601_v3, %s2646_s11 }
0x15ac   :  { %v1836_v58 = vpop.permute.xlu1 %1835 }
0x15ad   :  { %v1838_v32 = vpop.permute.xlu0 %1837  ;;  %v1841_v59 = vmul.f32 %v2589_v23, %v1836_v58 }
0x15ae   :  { %v1842_v33 = vmul.f32 %v2591_v27, %v1838_v32  ;;  %v1972_v27 = vld [vmem:[%s3173_s5 + $0x18] sm:$0xff]  ;;  %s2648_s5 = smov [#allocation2]  }
0x15af   :  { %v1843_v18 = vpack.c.bf16 %v1841_v59, %v1841_v59 }
0x15b0   :  { %v1844_v19 = vpack.c.bf16 %v1842_v33, %v1842_v33 }
0x15b1   :  { %v1847_v44 = vunpack.c.l.b16 %v1843_v18 }
0x15b2   :  { %v1848_v60 = vunpack.c.l.b16 %v1844_v19 }
0x15b3   :  { %v1849_v5 = vrot.slane %v1847_v44, 7 }
0x15b4   :  { %v1850_v61 = vrot.slane %v1848_v60, 6 }
0x15b6   :  { %v1851_v34 = vsel %vm260_vm3, %v1850_v61, %v1849_v5 }
0x15b7   :  { %v1852_v62 = vpack.c.b16 %v1851_v34, %v1851_v34 }
0x15b9   :  { %1853 = vrot.lane.b32.xlu0 %v1852_v62, %s2647_s12 }
0x15e8   :  { %v1741_v38 = vpop.permute.xlu1 %1740 }
0x15e9   :  { %v1743_v63 = vmul.f32 %v2595_v14, %v1741_v38  ;;  %v2115_v14 = vld [vmem:[%s3174_s6] ss:$0 sm:$0xff] }
0x15eb   :  { %v1898_v2 = vpack.c.bf16 %v1743_v63, %v1743_v63 }
0x15ed   :  { %1900 = vrot.lane.b32.xlu1 %v1898_v2, %s2647_s12 }
0x162b   :  { %v1854_v11 = vpop.permute.xlu0 %1853 }
0x162c   :  { %2384 = vmatmul.mubr.msk.bf16.vlgmr.msra.gmra.mxu1 %vm149_vm4, %v1854_v11 }
0x162d   :  { %2403 = vmatprep.mubr.msk.f32.mxu1 %vm2644_vm2, %v2643_v1  ;;  %2396 = vmatpush3.msra.mxu1 %v1972_v27 }
0x162e   :  { %2397 = vmatprep.subr.mxu1 %v2643_v1 }
0x162f   :  { %2398 = vmatpush3.msra.mxu1 %v1971_v28 }
0x1630   :  { %2399 = vmatprep.subr.mxu1 %v2643_v1 }
0x1631   :  { %2400 = vmatpush3.msra.mxu1 %v1970_v0 }
0x1632   :  { %2401 = vmatprep.subr.mxu1 %v2643_v1 }
0x1633   :  { %2402 = vmatpush3.msra.mxu1 %v1969_v29 }
0x165f   :  { %v1901_v4 = vpop.permute.xlu1 %1900 }
0x1660   :  { %2392 = vmatmul.mubr.msk.bf16.vlgmr.msra.gmra.mxu0 %vm149_vm4, %v1901_v4 }
0x16ec   :  { %v1892_v6 = vpop.f32.mrf.mxu1 }
0x16ed   :  { %v1893_v13 = vadd.f32 %v3074_v57, %v1892_v6 }
0x16ee   :  { %v2385_v7 = vpop.f32.mrf.mxu1 }
0x16f0   :  { %v1895_v35 = vpop.f32.mrf.mxu1 }
0x16f2   :  { %v2386_v8 = vpop.f32.mrf.mxu1 }
0x1720   :  { %v1939_v52 = vpop.f32.mrf.mxu0 }
0x1721   :  { %v1945_v48 = vadd.f32 %v1939_v52, %v1893_v13 }
0x1722   :  { %v2393_v55 = vpop.f32.mrf.mxu0 }
0x1723   :  { %2602 = vtanh.f32 %v1945_v48  ;;  %v1946_v16 = vsub.f32 0.0, %v1945_v48 }
0x1724   :  { %v1942_v12 = vpop.f32.mrf.mxu0 }
0x1725   :  { %v1947_v17 = vmul.f32 1.442695, %v1946_v16 }
0x1726   :  { %v2394_v26 = vpop.f32.mrf.mxu0 }
0x1727   :  { %2604 = vpow2.f32 %v1947_v17 }
0x1730   :  { %v2603_v10 = vpop.eup %2602 }
0x1731   :  { %1954 = vrot.lane.b32.xlu0 %v2603_v10, %s2646_s11 }
0x1734   :  { %v2605_v20 = vpop.eup %2604 }
0x1735   :  { %v1949_v43 = vadd.f32 1.0, %v2605_v20 }
0x1737   :  { %2606 = vrcp.f32 %v1949_v43 }
0x1744   :  { %v2607_v21 = vpop.eup %2606 }
0x1745   :  { %v1952_v57 = vmul.f32 %v2607_v21, %v1737_v30 }
0x17a3   :  { %v1955_v22 = vpop.permute.xlu0 %1954 }
0x17a4   :  { %v1957_v45 = vmul.f32 %v2607_v21, %v1955_v22 }
0x17a6   :  { %1959 = vrot.lane.b32.xlu1 %v1957_v45, %s2647_s12 }
0x1818   :  { %v1960_v23 = vpop.permute.xlu1 %1959 }
0x1819   :  { %v1962_v25 = vadd.f32 %v1960_v23, %v1952_v57 }
0x181b   :  { %2608 = vtanh.f32 %v1962_v25 }
0x1828   :  { %v2609_v42 = vpop.eup %2608 }
0x1829   :  { %1965 = vrot.lane.b32.xlu0 %v2609_v42, %s2646_s11  ;;  %s2069_s11 = sshll.u32 %s2648_s5, 4  ;;  %s2070_s11 = int_to_ptr.vmem [resolvable:$true] %s2069_s11 }
0x182a   :  { %p2626_p1 = scmp.lt.s32.totalorder %s2070_s11, %s2070_s11 }
0x189b   :  { %v1966_v31 = vpop.permute.xlu0 %1965 }
0x189c   :  { %v1968_v9 = vmul.f32 %v2607_v21, %v1966_v31 }
0x189e   :  { %1981 = vrot.lane.b32.xlu1 %v1968_v9, %s2647_s12  ;;  %s2621_s12 = scalar_lea.vmem %s2070_s11, 32 }
0x189f   :  { %p2622_p0 = scmp.ne.s32.totalorder %s2070_s11, %s2621_s12  ;;  %p2627_p2 = scmp.lt.s32.totalorder %s2621_s12, %s2621_s12 }
0x18a1   :  { %p2628_p3 = por %p2627_p2, %p2626_p1 }
0x18a3   :  { %p2629_p4 = pnand %p2628_p3, %p2622_p0 }
0x1910   :  { %v1982_v36 = vpop.permute.xlu1 %1981 }
0x1911   :  { %2404 = vmatmul.mubr.msk.f32.vlgmr.msra.gmra.mxu1 %vm149_vm4, %v1982_v36 }
0x19d1   :  { %v2051_v53 = vpop.f32.mrf.mxu1 }
0x19d2   :  { %v2052_v39 = vadd.f32 %v2115_v14, %v2051_v53 }
0x19d3   :  { %v2405_v41 = vpop.f32.mrf.mxu1 }
0x19d4   :  { %v2117_v46 = vmul.f32 -1.442695, %v2052_v39 }
0x19d6   :  { %2610 = vpow2.f32 %v2117_v46 }
0x19e3   :  { %v2611_v1 = vpop.eup %2610 }
0x19e4   :  { %v2058_v47 = vadd.f32 1.0, %v2611_v1 }
0x19e6   :  { %2612 = vrcp.f32 %v2058_v47 }
0x19f3   :  { %v2613_v49 = vpop.eup %2612 }
0x19f4   :  { %2062 = vst.msk [vmem:[#allocation2] sm:$0x3] %vm2061_vm5, %v2613_v49 }
0x19f5   :  { %2632 = shalt.err (!%p2629_p4)
}
0x19f6   :  { %2072 = dma.vmem_to_hbm [thread:$0]  %s2070_s11, 32, %s3175_s7, [#allocation3]  }
0x19f7   :  { %2641 = dma.done.wait [#allocation3], 32  }
0x19f8   :  { %2642 = vsyncadd [#allocation3], 4294967264 }
0x19f9   :  { %2076 = vsyncpa [#allocation3], 1 }

</bundles_post_ra>
